<compile_context>
chip_gen: v6e
topology: v6e:2x2x1
jax: 0.10.0
libtpu: 0.0.40
codegen_flags: <defaults>
</compile_context>

<pallas_src>
import numpy as np

import jax
import jax.numpy as jnp
from jax.experimental import pallas as pl
from jax.experimental.pallas import tpu as pltpu

FMAP_BASE = 64
FMAP_MAX = 32
LRELU_SLOPE = 0.2
PN_EPS = 1e-8


def nf(stage, fmap_base=FMAP_BASE, fmap_max=FMAP_MAX):
    return int(min(int(fmap_base) / 2 ** stage, fmap_max))


# --------------------------------------------------------------------------
# Host-side (numpy / jnp) construction of the constant conv operators.
# --------------------------------------------------------------------------

def _shift_rows_np(D, H, kd, kh):
    """S[(d*H+h), (d'*H+h')] = 1 where d'=d+kd-1, h'=h+kh-1 (zero row if OOB)."""
    S = np.zeros((D * H, D * H), np.float32)
    for d in range(D):
        for h in range(H):
            ds, hs = d + kd - 1, h + kh - 1
            if 0 <= ds < D and 0 <= hs < H:
                S[d * H + h, ds * H + hs] = 1.0
    return S


def _upsample_rows_np(Din, Hin):
    """Nearest 2x upsample over (d, h) rows: (D*H, Din*Hin)."""
    D, H = 2 * Din, 2 * Hin
    U = np.zeros((D * H, Din * Hin), np.float32)
    for d in range(D):
        for h in range(H):
            U[d * H + h, (d // 2) * Hin + (h // 2)] = 1.0
    return U


def _upsample_cols_np(Win, C):
    """Nearest 2x upsample over the (w, c) lane axis: (Win*C, 2*Win*C)."""
    W = 2 * Win
    U = np.zeros((Win * C, W * C), np.float32)
    for w in range(W):
        for c in range(C):
            U[(w // 2) * C + c, w * C + c] = 1.0
    return U


def _band_sel_np(W):
    """sel[kw, w', w] = 1 iff w' == w + kw - 1 (implicit zero pad in W)."""
    sel = np.zeros((3, W, W), np.float32)
    for kw in range(3):
        for w in range(W):
            wp = w + kw - 1
            if 0 <= wp < W:
                sel[kw, wp, w] = 1.0
    return sel


def _avg_mat_np(W, C):
    """Block-diagonal channel-averaging matrix for PixelNorm in (.., W*C)."""
    return np.kron(np.eye(W, dtype=np.float32),
                   np.full((C, C), 1.0 / C, np.float32))


def _conv_plan(w, b, D, H, W, *, upsample):
    """Precompute (A_t, B_t, bias) so that  out2d = sum_t A_t @ x2d @ B_t + bias
    equals a zero-padded 3x3x3 conv (optionally fused with 2x nearest upsample)
    on the (D*H, W*Cout) layout."""
    Cin, Cout = w.shape[3], w.shape[4]
    sel = _band_sel_np(W)                                      # (3, W, W)
    band = jnp.einsum('kpw,abkco->abpcwo', jnp.asarray(sel), w)
    band = band.reshape(9, W * Cin, W * Cout)                  # (9, W*Cin, W*Cout)
    shifts = np.stack([_shift_rows_np(D, H, kd, kh)
                       for kd in range(3) for kh in range(3)])  # (9, DH, DH)
    if upsample:
        Din, Hin, Win = D // 2, H // 2, W // 2
        urow = _upsample_rows_np(Din, Hin)                      # (DH, DinHin)
        ucol = _upsample_cols_np(Win, Cin)                      # (WinCin, WCin)
        a = jnp.asarray(np.einsum('tij,jk->tik', shifts, urow))
        bm = jnp.einsum('ij,tjk->tik', jnp.asarray(ucol), band)
    else:
        a = jnp.asarray(shifts)
        bm = band
    bias = jnp.tile(b, (W,)).reshape(1, W * Cout)
    return a, bm, bias


def _rgb_plan(w, b, W):
    """1x1x1 Conv3d in the (rows, W*Cin) layout: kron(I_W, w) + tiled bias."""
    R = jnp.kron(jnp.eye(W, dtype=jnp.float32), w)              # (W*Cin, W*nc)
    bias = jnp.tile(b, (W,)).reshape(1, W * b.shape[0])
    return R, bias


# --------------------------------------------------------------------------
# Pallas kernels
# --------------------------------------------------------------------------

def _leaky_pixelnorm(x, avg):
    """LeakyReLU(0.2) + PixelNorm over each C-sized lane group (via avg matmul)."""
    x = jnp.where(x >= 0.0, x, LRELU_SLOPE * x)
    msq = jnp.dot(x * x, avg, preferred_element_type=jnp.float32)
    return x * jax.lax.rsqrt(msq + PN_EPS)


def _conv_taps(x, a_ref, b_ref, bias_ref):
    """out = sum_t a[t] @ x @ b[t] + bias  (the precomputed-operator conv)."""
    acc = jnp.zeros((a_ref.shape[1], b_ref.shape[2]), jnp.float32) + bias_ref[...]
    for t in range(9):
        acc = acc + jnp.dot(
            jnp.dot(a_ref[t], x, preferred_element_type=jnp.float32),
            b_ref[t], preferred_element_type=jnp.float32)
    return acc


def _base_block_kernel(x_ref, dw_ref, db_ref, avg_ref, a_ref, b_ref, cb_ref,
                       o_ref):
    """Fused BaseGenBlock: dense + act/PN + 3x3x3 conv + act/PN (one batch)."""
    _, R, L = o_ref.shape
    y = jnp.dot(x_ref[0], dw_ref[...],
                preferred_element_type=jnp.float32) + db_ref[...]
    y = y.reshape(R, L)                       # (D*H, W*C) channels-last rows
    y = _leaky_pixelnorm(y, avg_ref[...])
    y = _conv_taps(y, a_ref, b_ref, cb_ref)
    y = _leaky_pixelnorm(y, avg_ref[...])
    o_ref[0] = y


def _add_block_kernel(y_ref, a1_ref, b1_ref, bias1_ref,
                      a2_ref, b2_ref, bias2_ref, avg_ref, o_ref):
    """Fused AddGenBlock: 2x upsample (folded into a1/b1) + conv + conv."""
    y = y_ref[0]
    h = _leaky_pixelnorm(_conv_taps(y, a1_ref, b1_ref, bias1_ref), avg_ref[...])
    h = _leaky_pixelnorm(_conv_taps(h, a2_ref, b2_ref, bias2_ref), avg_ref[...])
    o_ref[0] = h


def _final_stage_kernel(y_ref, a1_ref, b1_ref, bias1_ref,
                        a2_ref, b2_ref, bias2_ref, avg_ref,
                        rgbc_w_ref, rgbc_b_ref, rgbp_w_ref, rgbp_b_ref,
                        urow_ref, ucol_ref, alpha_ref, o_ref):
    """Fused fade-in tail: AddGenBlock + straight RGB + residual RGB(+upsample)
    + alpha blend, all on the VMEM-resident per-batch activation."""
    y = y_ref[0]                                                 # (Rin, Lin)
    h = _leaky_pixelnorm(_conv_taps(y, a1_ref, b1_ref, bias1_ref), avg_ref[...])
    h = _leaky_pixelnorm(_conv_taps(h, a2_ref, b2_ref, bias2_ref), avg_ref[...])
    straight = jnp.dot(h, rgbc_w_ref[...],
                       preferred_element_type=jnp.float32) + rgbc_b_ref[...]
    res = jnp.dot(y, rgbp_w_ref[...],
                  preferred_element_type=jnp.float32) + rgbp_b_ref[...]
    res = jnp.dot(jnp.dot(urow_ref[...], res,
                          preferred_element_type=jnp.float32),
                  ucol_ref[...], preferred_element_type=jnp.float32)
    alpha = alpha_ref[0, 0]
    o_ref[0] = alpha * straight + (1.0 - alpha) * res


def _rgb_kernel(y_ref, w_ref, b_ref, o_ref):
    """Standalone 1x1x1 to-RGB conv (depth == 2 path only)."""
    o_ref[0] = jnp.dot(y_ref[0], w_ref[...],
                       preferred_element_type=jnp.float32) + b_ref[...]


# --------------------------------------------------------------------------
# Pallas wrappers (grid over batch, whole per-batch block in VMEM)
# --------------------------------------------------------------------------

def _per_batch(shape):
    ndim = len(shape)

    def imap(n):
        return (n,) + (0,) * (ndim - 1)

    return pl.BlockSpec((1,) + tuple(shape[1:]), imap)


def _replicated(shape):
    ndim = len(shape)

    def imap(n):
        return (0,) * ndim

    return pl.BlockSpec(tuple(shape), imap)


_PARALLEL = pltpu.CompilerParams(dimension_semantics=("parallel",))


def base_block_apply(x, plan):
    N = x.shape[0]
    R, L = plan['out_rows'], plan['out_lanes']
    x3 = x.reshape(N, 1, x.shape[1])
    args = (x3, plan['dense_w'], plan['dense_b'], plan['avg'],
            plan['conv_a'], plan['conv_b'], plan['conv_bias'])
    in_specs = [_per_batch(x3.shape)] + [_replicated(a.shape) for a in args[1:]]
    return pl.pallas_call(
        _base_block_kernel,
        out_shape=jax.ShapeDtypeStruct((N, R, L), jnp.float32),
        grid=(N,),
        in_specs=in_specs,
        out_specs=_per_batch((N, R, L)),
        compiler_params=_PARALLEL,
    )(*args)


def add_block_apply(y, blk):
    N = y.shape[0]
    Rout = blk['res'] * blk['res']
    Lout = blk['b1'].shape[2]
    args = (y, blk['a1'], blk['b1'], blk['bias1'],
            blk['a2'], blk['b2'], blk['bias2'], blk['avg'])
    in_specs = [_per_batch(y.shape)] + [_replicated(a.shape) for a in args[1:]]
    return pl.pallas_call(
        _add_block_kernel,
        out_shape=jax.ShapeDtypeStruct((N, Rout, Lout), jnp.float32),
        grid=(N,),
        in_specs=in_specs,
        out_specs=_per_batch((N, Rout, Lout)),
        compiler_params=_PARALLEL,
    )(*args)


def final_stage_apply(y, blk, rgb_prev, rgb_cur, alpha):
    N = y.shape[0]
    res = blk['res']
    Rout = res * res
    Lout = rgb_cur['w'].shape[1]
    alpha_arr = jnp.full((1, 1), alpha, jnp.float32)
    args = (y, blk['a1'], blk['b1'], blk['bias1'],
            blk['a2'], blk['b2'], blk['bias2'], blk['avg'],
            rgb_cur['w'], rgb_cur['b'], rgb_prev['w'], rgb_prev['b'],
            blk['urow'], blk['ucol_rgb'], alpha_arr)
    in_specs = [_per_batch(y.shape)] + [_replicated(a.shape) for a in args[1:]]
    return pl.pallas_call(
        _final_stage_kernel,
        out_shape=jax.ShapeDtypeStruct((N, Rout, Lout), jnp.float32),
        grid=(N,),
        in_specs=in_specs,
        out_specs=_per_batch((N, Rout, Lout)),
        compiler_params=_PARALLEL,
    )(*args)


def rgb_apply(y, rgb):
    N, R, _ = y.shape
    Lout = rgb['w'].shape[1]
    args = (y, rgb['w'], rgb['b'])
    in_specs = [_per_batch(y.shape)] + [_replicated(a.shape) for a in args[1:]]
    return pl.pallas_call(
        _rgb_kernel,
        out_shape=jax.ShapeDtypeStruct((N, R, Lout), jnp.float32),
        grid=(N,),
        in_specs=in_specs,
        out_specs=_per_batch((N, R, Lout)),
        compiler_params=_PARALLEL,
    )(*args)


# --------------------------------------------------------------------------
# Parameters and plan
# --------------------------------------------------------------------------

def init_params(key, depth, num_channels, latent_size):
    keys = iter(jax.random.split(key, 4 * depth + 8))

    def w_init(k, shape, fan_in):
        return jax.random.normal(k, shape, jnp.float32) * (2.0 / fan_in) ** 0.5

    c1 = nf(1)
    params = {
        'base': {
            'dense_w': w_init(next(keys), (latent_size, 4 * 4 * 4 * c1),
                              latent_size),
            'dense_b': jnp.zeros((4 * 4 * 4 * c1,), jnp.float32),
            'conv_w': w_init(next(keys), (3, 3, 3, c1, c1), 27 * c1),
            'conv_b': jnp.zeros((c1,), jnp.float32),
        },
        'blocks': [],
        'rgb': [],
    }
    for stage in range(1, depth - 1):
        cin, cout = nf(stage), nf(stage + 1)
        params['blocks'].append({
            'conv1_w': w_init(next(keys), (3, 3, 3, cin, cout), 27 * cin),
            'conv1_b': jnp.zeros((cout,), jnp.float32),
            'conv2_w': w_init(next(keys), (3, 3, 3, cout, cout), 27 * cout),
            'conv2_b': jnp.zeros((cout,), jnp.float32),
        })
    for stage in range(1, depth):
        cin = nf(stage)
        params['rgb'].append({
            'w': w_init(next(keys), (cin, num_channels), cin),
            'b': jnp.zeros((num_channels,), jnp.float32),
        })
    return params


def build_plan(params, depth):
    """Precompute the constant shift/band/upsample operators for the kernels."""
    del depth  # all stages are prepared; forward picks what it needs
    nc = params['rgb'][0]['w'].shape[1]
    c1 = params['base']['conv_w'].shape[-1]
    base = params['base']
    a, bm, bias = _conv_plan(base['conv_w'], base['conv_b'], 4, 4, 4,
                             upsample=False)
    plan = {
        'base': {
            'dense_w': base['dense_w'],
            'dense_b': base['dense_b'].reshape(1, -1),
            'avg': jnp.asarray(_avg_mat_np(4, c1)),
            'conv_a': a, 'conv_b': bm, 'conv_bias': bias,
            'out_rows': 4 * 4, 'out_lanes': 4 * c1,
        },
        'blocks': [],
        'rgb': [],
    }
    for k, blk in enumerate(params['blocks']):
        res = 4 * 2 ** (k + 1)
        cmid = blk['conv1_w'].shape[-1]
        a1, b1, bias1 = _conv_plan(blk['conv1_w'], blk['conv1_b'],
                                   res, res, res, upsample=True)
        a2, b2, bias2 = _conv_plan(blk['conv2_w'], blk['conv2_b'],
                                   res, res, res, upsample=False)
        plan['blocks'].append({
            'a1': a1, 'b1': b1, 'bias1': bias1,
            'a2': a2, 'b2': b2, 'bias2': bias2,
            'avg': jnp.asarray(_avg_mat_np(res, cmid)),
            'urow': jnp.asarray(_upsample_rows_np(res // 2, res // 2)),
            'ucol_rgb': jnp.asarray(_upsample_cols_np(res // 2, nc)),
            'res': res,
        })
    for k, rgb in enumerate(params['rgb']):
        res = 4 * 2 ** k
        w, b = _rgb_plan(rgb['w'], rgb['b'], res)
        plan['rgb'].append({'w': w, 'b': b, 'res': res})
    return plan


# --------------------------------------------------------------------------
# Generator forward
# --------------------------------------------------------------------------

def generator_forward(plan, x, depth, alpha, *, model_depth):
    depth = model_depth if depth is None else depth
    y = base_block_apply(x, plan['base'])                  # (N, 16, 4*c1)
    if depth == 2:
        out = rgb_apply(y, plan['rgb'][0])                 # (N, 16, 4*nc)
        res = 4
    else:
        for blk in plan['blocks'][:depth - 3]:
            y = add_block_apply(y, blk)
        blk = plan['blocks'][depth - 3]
        out = final_stage_apply(y, blk, plan['rgb'][depth - 3],
                                plan['rgb'][depth - 2], alpha)
        res = blk['res']
    N = x.shape[0]
    nc = out.shape[-1] // res
    out = out.reshape(N, res, res, res, nc)
    # NDHWC -> NCDHW (PyTorch Conv3d convention); tiny final transpose in XLA.
    return jnp.transpose(out, (0, 4, 1, 2, 3))


if __name__ == "__main__":
    DEPTH = 3
    NUM_CHANNELS = 3
    LATENT_SIZE = 32
    BATCH = 2

    key = jax.random.PRNGKey(0)
    pkey, xkey = jax.random.split(key)
    params = init_params(pkey, DEPTH, NUM_CHANNELS, LATENT_SIZE)
    plan = build_plan(params, DEPTH)
    x = jax.random.normal(xkey, (BATCH, LATENT_SIZE), jnp.float32)

    out = generator_forward(plan, x, None, 0.7, model_depth=DEPTH)
    out = jax.block_until_ready(out)
    assert out.shape == (BATCH, NUM_CHANNELS, 8, 8, 8), out.shape
    assert out.dtype == jnp.float32
    assert bool(jnp.all(jnp.isfinite(out)))
    print("KERNEL_OK")
</pallas_src>

<mosaic_0001>
module attributes {stable_mosaic.version = 11 : i64} {
  func.func @_base_block_kernel(%arg0: i32, %arg1: memref<1x1x32xf32, #tpu.memory_space<vmem>>, %arg2: memref<32x2048xf32, #tpu.memory_space<vmem>>, %arg3: memref<1x2048xf32, #tpu.memory_space<vmem>>, %arg4: memref<128x128xf32, #tpu.memory_space<vmem>>, %arg5: memref<9x16x16xf32, #tpu.memory_space<vmem>>, %arg6: memref<9x128x128xf32, #tpu.memory_space<vmem>>, %arg7: memref<1x128xf32, #tpu.memory_space<vmem>>, %arg8: memref<1x16x128xf32, #tpu.memory_space<vmem>>) attributes {dimension_semantics = [#tpu.dimension_semantics<parallel>], iteration_bounds = array<i64: 2>, scalar_prefetch = 0 : i64, scratch_operands = 0 : i64, tpu.core_type = #tpu.core_type<tc>, window_params = [{transform_indices = @transform_0, window_bounds = array<i64: 1, 1, 32>}, {pipeline_mode = #tpu.pipeline_mode<synchronous>, transform_indices = @transform_1, window_bounds = array<i64: 32, 2048>}, {pipeline_mode = #tpu.pipeline_mode<synchronous>, transform_indices = @transform_2, window_bounds = array<i64: 1, 2048>}, {pipeline_mode = #tpu.pipeline_mode<synchronous>, transform_indices = @transform_3, window_bounds = array<i64: 128, 128>}, {pipeline_mode = #tpu.pipeline_mode<synchronous>, transform_indices = @transform_4, window_bounds = array<i64: 9, 16, 16>}, {pipeline_mode = #tpu.pipeline_mode<synchronous>, transform_indices = @transform_5, window_bounds = array<i64: 9, 128, 128>}, {pipeline_mode = #tpu.pipeline_mode<synchronous>, transform_indices = @transform_6, window_bounds = array<i64: 1, 128>}, {transform_indices = @transform_7, window_bounds = array<i64: 1, 16, 128>}]} {
    %c0 = arith.constant 0 : index
    %c0_0 = arith.constant 0 : index
    %c0_1 = arith.constant 0 : index
    %0 = vector.load %arg1[%c0, %c0_0, %c0_1] : memref<1x1x32xf32, #tpu.memory_space<vmem>>, vector<1x1x32xf32>
    %1 = vector.shape_cast %0 : vector<1x1x32xf32> to vector<1x32xf32>
    %c0_2 = arith.constant 0 : index
    %c0_3 = arith.constant 0 : index
    %2 = vector.load %arg2[%c0_2, %c0_3] : memref<32x2048xf32, #tpu.memory_space<vmem>>, vector<32x2048xf32>
    %cst = arith.constant dense<0.000000e+00> : vector<1x2048xf32>
    %3 = tpu.matmul %1, %2, %cst {dimension_numbers = #tpu.dot_dimension_numbers<[1], [0], [0], [1], [0, 0, 1, 1], [], []>} : vector<1x32xf32>, vector<32x2048xf32>, vector<1x2048xf32> -> vector<1x2048xf32>
    %c0_4 = arith.constant 0 : index
    %c0_5 = arith.constant 0 : index
    %4 = vector.load %arg3[%c0_4, %c0_5] : memref<1x2048xf32, #tpu.memory_space<vmem>>, vector<1x2048xf32>
    %5 = arith.addf %3, %4 : vector<1x2048xf32>
    %6 = vector.shape_cast %5 : vector<1x2048xf32> to vector<16x128xf32>
    %c0_6 = arith.constant 0 : index
    %c0_7 = arith.constant 0 : index
    %7 = vector.load %arg4[%c0_6, %c0_7] : memref<128x128xf32, #tpu.memory_space<vmem>>, vector<128x128xf32>
    %cst_8 = arith.constant 0.000000e+00 : f32
    %8 = vector.broadcast %cst_8 : f32 to vector<16x128xf32>
    %9 = arith.cmpf oge, %6, %8 : vector<16x128xf32>
    %cst_9 = arith.constant 2.000000e-01 : f32
    %10 = vector.broadcast %cst_9 : f32 to vector<16x128xf32>
    %11 = arith.mulf %10, %6 : vector<16x128xf32>
    %12 = arith.select %9, %6, %11 : vector<16x128xi1>, vector<16x128xf32>
    %13 = arith.mulf %12, %12 : vector<16x128xf32>
    %cst_10 = arith.constant dense<0.000000e+00> : vector<16x128xf32>
    %14 = tpu.matmul %13, %7, %cst_10 {dimension_numbers = #tpu.dot_dimension_numbers<[1], [0], [0], [1], [0, 0, 1, 1], [], []>} : vector<16x128xf32>, vector<128x128xf32>, vector<16x128xf32> -> vector<16x128xf32>
    %cst_11 = arith.constant 9.99999993E-9 : f32
    %15 = vector.broadcast %cst_11 : f32 to vector<16x128xf32>
    %16 = arith.addf %14, %15 : vector<16x128xf32>
    %17 = math.rsqrt %16 : vector<16x128xf32>
    %18 = arith.mulf %12, %17 : vector<16x128xf32>
    %cst_12 = arith.constant 0.000000e+00 : f32
    %19 = vector.broadcast %cst_12 : f32 to vector<16x128xf32>
    %c0_13 = arith.constant 0 : index
    %c0_14 = arith.constant 0 : index
    %20 = vector.load %arg7[%c0_13, %c0_14] : memref<1x128xf32, #tpu.memory_space<vmem>>, vector<1x128xf32>
    %21 = vector.broadcast %20 : vector<1x128xf32> to vector<16x128xf32>
    %22 = arith.addf %19, %21 : vector<16x128xf32>
    %c0_15 = arith.constant 0 : index
    %c0_16 = arith.constant 0 : index
    %c0_17 = arith.constant 0 : index
    %23 = vector.load %arg5[%c0_15, %c0_16, %c0_17] : memref<9x16x16xf32, #tpu.memory_space<vmem>>, vector<1x16x16xf32>
    %24 = vector.shape_cast %23 : vector<1x16x16xf32> to vector<16x16xf32>
    %cst_18 = arith.constant dense<0.000000e+00> : vector<16x128xf32>
    %25 = tpu.matmul %24, %18, %cst_18 {dimension_numbers = #tpu.dot_dimension_numbers<[1], [0], [0], [1], [0, 0, 1, 1], [], []>} : vector<16x16xf32>, vector<16x128xf32>, vector<16x128xf32> -> vector<16x128xf32>
    %c0_19 = arith.constant 0 : index
    %c0_20 = arith.constant 0 : index
    %c0_21 = arith.constant 0 : index
    %26 = vector.load %arg6[%c0_19, %c0_20, %c0_21] : memref<9x128x128xf32, #tpu.memory_space<vmem>>, vector<1x128x128xf32>
    %27 = vector.shape_cast %26 : vector<1x128x128xf32> to vector<128x128xf32>
    %cst_22 = arith.constant dense<0.000000e+00> : vector<16x128xf32>
    %28 = tpu.matmul %25, %27, %cst_22 {dimension_numbers = #tpu.dot_dimension_numbers<[1], [0], [0], [1], [0, 0, 1, 1], [], []>} : vector<16x128xf32>, vector<128x128xf32>, vector<16x128xf32> -> vector<16x128xf32>
    %29 = arith.addf %22, %28 : vector<16x128xf32>
    %c1 = arith.constant 1 : index
    %c0_23 = arith.constant 0 : index
    %c0_24 = arith.constant 0 : index
    %30 = vector.load %arg5[%c1, %c0_23, %c0_24] : memref<9x16x16xf32, #tpu.memory_space<vmem>>, vector<1x16x16xf32>
    %31 = vector.shape_cast %30 : vector<1x16x16xf32> to vector<16x16xf32>
    %cst_25 = arith.constant dense<0.000000e+00> : vector<16x128xf32>
    %32 = tpu.matmul %31, %18, %cst_25 {dimension_numbers = #tpu.dot_dimension_numbers<[1], [0], [0], [1], [0, 0, 1, 1], [], []>} : vector<16x16xf32>, vector<16x128xf32>, vector<16x128xf32> -> vector<16x128xf32>
    %c1_26 = arith.constant 1 : index
    %c0_27 = arith.constant 0 : index
    %c0_28 = arith.constant 0 : index
    %33 = vector.load %arg6[%c1_26, %c0_27, %c0_28] : memref<9x128x128xf32, #tpu.memory_space<vmem>>, vector<1x128x128xf32>
    %34 = vector.shape_cast %33 : vector<1x128x128xf32> to vector<128x128xf32>
    %cst_29 = arith.constant dense<0.000000e+00> : vector<16x128xf32>
    %35 = tpu.matmul %32, %34, %cst_29 {dimension_numbers = #tpu.dot_dimension_numbers<[1], [0], [0], [1], [0, 0, 1, 1], [], []>} : vector<16x128xf32>, vector<128x128xf32>, vector<16x128xf32> -> vector<16x128xf32>
    %36 = arith.addf %29, %35 : vector<16x128xf32>
    %c2 = arith.constant 2 : index
    %c0_30 = arith.constant 0 : index
    %c0_31 = arith.constant 0 : index
    %37 = vector.load %arg5[%c2, %c0_30, %c0_31] : memref<9x16x16xf32, #tpu.memory_space<vmem>>, vector<1x16x16xf32>
    %38 = vector.shape_cast %37 : vector<1x16x16xf32> to vector<16x16xf32>
    %cst_32 = arith.constant dense<0.000000e+00> : vector<16x128xf32>
    %39 = tpu.matmul %38, %18, %cst_32 {dimension_numbers = #tpu.dot_dimension_numbers<[1], [0], [0], [1], [0, 0, 1, 1], [], []>} : vector<16x16xf32>, vector<16x128xf32>, vector<16x128xf32> -> vector<16x128xf32>
    %c2_33 = arith.constant 2 : index
    %c0_34 = arith.constant 0 : index
    %c0_35 = arith.constant 0 : index
    %40 = vector.load %arg6[%c2_33, %c0_34, %c0_35] : memref<9x128x128xf32, #tpu.memory_space<vmem>>, vector<1x128x128xf32>
    %41 = vector.shape_cast %40 : vector<1x128x128xf32> to vector<128x128xf32>
    %cst_36 = arith.constant dense<0.000000e+00> : vector<16x128xf32>
    %42 = tpu.matmul %39, %41, %cst_36 {dimension_numbers = #tpu.dot_dimension_numbers<[1], [0], [0], [1], [0, 0, 1, 1], [], []>} : vector<16x128xf32>, vector<128x128xf32>, vector<16x128xf32> -> vector<16x128xf32>
    %43 = arith.addf %36, %42 : vector<16x128xf32>
    %c3 = arith.constant 3 : index
    %c0_37 = arith.constant 0 : index
    %c0_38 = arith.constant 0 : index
    %44 = vector.load %arg5[%c3, %c0_37, %c0_38] : memref<9x16x16xf32, #tpu.memory_space<vmem>>, vector<1x16x16xf32>
    %45 = vector.shape_cast %44 : vector<1x16x16xf32> to vector<16x16xf32>
    %cst_39 = arith.constant dense<0.000000e+00> : vector<16x128xf32>
    %46 = tpu.matmul %45, %18, %cst_39 {dimension_numbers = #tpu.dot_dimension_numbers<[1], [0], [0], [1], [0, 0, 1, 1], [], []>} : vector<16x16xf32>, vector<16x128xf32>, vector<16x128xf32> -> vector<16x128xf32>
    %c3_40 = arith.constant 3 : index
    %c0_41 = arith.constant 0 : index
    %c0_42 = arith.constant 0 : index
    %47 = vector.load %arg6[%c3_40, %c0_41, %c0_42] : memref<9x128x128xf32, #tpu.memory_space<vmem>>, vector<1x128x128xf32>
    %48 = vector.shape_cast %47 : vector<1x128x128xf32> to vector<128x128xf32>
    %cst_43 = arith.constant dense<0.000000e+00> : vector<16x128xf32>
    %49 = tpu.matmul %46, %48, %cst_43 {dimension_numbers = #tpu.dot_dimension_numbers<[1], [0], [0], [1], [0, 0, 1, 1], [], []>} : vector<16x128xf32>, vector<128x128xf32>, vector<16x128xf32> -> vector<16x128xf32>
    %50 = arith.addf %43, %49 : vector<16x128xf32>
    %c4 = arith.constant 4 : index
    %c0_44 = arith.constant 0 : index
    %c0_45 = arith.constant 0 : index
    %51 = vector.load %arg5[%c4, %c0_44, %c0_45] : memref<9x16x16xf32, #tpu.memory_space<vmem>>, vector<1x16x16xf32>
    %52 = vector.shape_cast %51 : vector<1x16x16xf32> to vector<16x16xf32>
    %cst_46 = arith.constant dense<0.000000e+00> : vector<16x128xf32>
    %53 = tpu.matmul %52, %18, %cst_46 {dimension_numbers = #tpu.dot_dimension_numbers<[1], [0], [0], [1], [0, 0, 1, 1], [], []>} : vector<16x16xf32>, vector<16x128xf32>, vector<16x128xf32> -> vector<16x128xf32>
    %c4_47 = arith.constant 4 : index
    %c0_48 = arith.constant 0 : index
    %c0_49 = arith.constant 0 : index
    %54 = vector.load %arg6[%c4_47, %c0_48, %c0_49] : memref<9x128x128xf32, #tpu.memory_space<vmem>>, vector<1x128x128xf32>
    %55 = vector.shape_cast %54 : vector<1x128x128xf32> to vector<128x128xf32>
    %cst_50 = arith.constant dense<0.000000e+00> : vector<16x128xf32>
    %56 = tpu.matmul %53, %55, %cst_50 {dimension_numbers = #tpu.dot_dimension_numbers<[1], [0], [0], [1], [0, 0, 1, 1], [], []>} : vector<16x128xf32>, vector<128x128xf32>, vector<16x128xf32> -> vector<16x128xf32>
    %57 = arith.addf %50, %56 : vector<16x128xf32>
    %c5 = arith.constant 5 : index
    %c0_51 = arith.constant 0 : index
    %c0_52 = arith.constant 0 : index
    %58 = vector.load %arg5[%c5, %c0_51, %c0_52] : memref<9x16x16xf32, #tpu.memory_space<vmem>>, vector<1x16x16xf32>
    %59 = vector.shape_cast %58 : vector<1x16x16xf32> to vector<16x16xf32>
    %cst_53 = arith.constant dense<0.000000e+00> : vector<16x128xf32>
    %60 = tpu.matmul %59, %18, %cst_53 {dimension_numbers = #tpu.dot_dimension_numbers<[1], [0], [0], [1], [0, 0, 1, 1], [], []>} : vector<16x16xf32>, vector<16x128xf32>, vector<16x128xf32> -> vector<16x128xf32>
    %c5_54 = arith.constant 5 : index
    %c0_55 = arith.constant 0 : index
    %c0_56 = arith.constant 0 : index
    %61 = vector.load %arg6[%c5_54, %c0_55, %c0_56] : memref<9x128x128xf32, #tpu.memory_space<vmem>>, vector<1x128x128xf32>
    %62 = vector.shape_cast %61 : vector<1x128x128xf32> to vector<128x128xf32>
    %cst_57 = arith.constant dense<0.000000e+00> : vector<16x128xf32>
    %63 = tpu.matmul %60, %62, %cst_57 {dimension_numbers = #tpu.dot_dimension_numbers<[1], [0], [0], [1], [0, 0, 1, 1], [], []>} : vector<16x128xf32>, vector<128x128xf32>, vector<16x128xf32> -> vector<16x128xf32>
    %64 = arith.addf %57, %63 : vector<16x128xf32>
    %c6 = arith.constant 6 : index
    %c0_58 = arith.constant 0 : index
    %c0_59 = arith.constant 0 : index
    %65 = vector.load %arg5[%c6, %c0_58, %c0_59] : memref<9x16x16xf32, #tpu.memory_space<vmem>>, vector<1x16x16xf32>
    %66 = vector.shape_cast %65 : vector<1x16x16xf32> to vector<16x16xf32>
    %cst_60 = arith.constant dense<0.000000e+00> : vector<16x128xf32>
    %67 = tpu.matmul %66, %18, %cst_60 {dimension_numbers = #tpu.dot_dimension_numbers<[1], [0], [0], [1], [0, 0, 1, 1], [], []>} : vector<16x16xf32>, vector<16x128xf32>, vector<16x128xf32> -> vector<16x128xf32>
    %c6_61 = arith.constant 6 : index
    %c0_62 = arith.constant 0 : index
    %c0_63 = arith.constant 0 : index
    %68 = vector.load %arg6[%c6_61, %c0_62, %c0_63] : memref<9x128x128xf32, #tpu.memory_space<vmem>>, vector<1x128x128xf32>
    %69 = vector.shape_cast %68 : vector<1x128x128xf32> to vector<128x128xf32>
    %cst_64 = arith.constant dense<0.000000e+00> : vector<16x128xf32>
    %70 = tpu.matmul %67, %69, %cst_64 {dimension_numbers = #tpu.dot_dimension_numbers<[1], [0], [0], [1], [0, 0, 1, 1], [], []>} : vector<16x128xf32>, vector<128x128xf32>, vector<16x128xf32> -> vector<16x128xf32>
    %71 = arith.addf %64, %70 : vector<16x128xf32>
    %c7 = arith.constant 7 : index
    %c0_65 = arith.constant 0 : index
    %c0_66 = arith.constant 0 : index
    %72 = vector.load %arg5[%c7, %c0_65, %c0_66] : memref<9x16x16xf32, #tpu.memory_space<vmem>>, vector<1x16x16xf32>
    %73 = vector.shape_cast %72 : vector<1x16x16xf32> to vector<16x16xf32>
    %cst_67 = arith.constant dense<0.000000e+00> : vector<16x128xf32>
    %74 = tpu.matmul %73, %18, %cst_67 {dimension_numbers = #tpu.dot_dimension_numbers<[1], [0], [0], [1], [0, 0, 1, 1], [], []>} : vector<16x16xf32>, vector<16x128xf32>, vector<16x128xf32> -> vector<16x128xf32>
    %c7_68 = arith.constant 7 : index
    %c0_69 = arith.constant 0 : index
    %c0_70 = arith.constant 0 : index
    %75 = vector.load %arg6[%c7_68, %c0_69, %c0_70] : memref<9x128x128xf32, #tpu.memory_space<vmem>>, vector<1x128x128xf32>
    %76 = vector.shape_cast %75 : vector<1x128x128xf32> to vector<128x128xf32>
    %cst_71 = arith.constant dense<0.000000e+00> : vector<16x128xf32>
    %77 = tpu.matmul %74, %76, %cst_71 {dimension_numbers = #tpu.dot_dimension_numbers<[1], [0], [0], [1], [0, 0, 1, 1], [], []>} : vector<16x128xf32>, vector<128x128xf32>, vector<16x128xf32> -> vector<16x128xf32>
    %78 = arith.addf %71, %77 : vector<16x128xf32>
    %c8 = arith.constant 8 : index
    %c0_72 = arith.constant 0 : index
    %c0_73 = arith.constant 0 : index
    %79 = vector.load %arg5[%c8, %c0_72, %c0_73] : memref<9x16x16xf32, #tpu.memory_space<vmem>>, vector<1x16x16xf32>
    %80 = vector.shape_cast %79 : vector<1x16x16xf32> to vector<16x16xf32>
    %cst_74 = arith.constant dense<0.000000e+00> : vector<16x128xf32>
    %81 = tpu.matmul %80, %18, %cst_74 {dimension_numbers = #tpu.dot_dimension_numbers<[1], [0], [0], [1], [0, 0, 1, 1], [], []>} : vector<16x16xf32>, vector<16x128xf32>, vector<16x128xf32> -> vector<16x128xf32>
    %c8_75 = arith.constant 8 : index
    %c0_76 = arith.constant 0 : index
    %c0_77 = arith.constant 0 : index
    %82 = vector.load %arg6[%c8_75, %c0_76, %c0_77] : memref<9x128x128xf32, #tpu.memory_space<vmem>>, vector<1x128x128xf32>
    %83 = vector.shape_cast %82 : vector<1x128x128xf32> to vector<128x128xf32>
    %cst_78 = arith.constant dense<0.000000e+00> : vector<16x128xf32>
    %84 = tpu.matmul %81, %83, %cst_78 {dimension_numbers = #tpu.dot_dimension_numbers<[1], [0], [0], [1], [0, 0, 1, 1], [], []>} : vector<16x128xf32>, vector<128x128xf32>, vector<16x128xf32> -> vector<16x128xf32>
    %85 = arith.addf %78, %84 : vector<16x128xf32>
    %c0_79 = arith.constant 0 : index
    %c0_80 = arith.constant 0 : index
    %86 = vector.load %arg4[%c0_79, %c0_80] : memref<128x128xf32, #tpu.memory_space<vmem>>, vector<128x128xf32>
    %cst_81 = arith.constant 0.000000e+00 : f32
    %87 = vector.broadcast %cst_81 : f32 to vector<16x128xf32>
    %88 = arith.cmpf oge, %85, %87 : vector<16x128xf32>
    %cst_82 = arith.constant 2.000000e-01 : f32
    %89 = vector.broadcast %cst_82 : f32 to vector<16x128xf32>
    %90 = arith.mulf %89, %85 : vector<16x128xf32>
    %91 = arith.select %88, %85, %90 : vector<16x128xi1>, vector<16x128xf32>
    %92 = arith.mulf %91, %91 : vector<16x128xf32>
    %cst_83 = arith.constant dense<0.000000e+00> : vector<16x128xf32>
    %93 = tpu.matmul %92, %86, %cst_83 {dimension_numbers = #tpu.dot_dimension_numbers<[1], [0], [0], [1], [0, 0, 1, 1], [], []>} : vector<16x128xf32>, vector<128x128xf32>, vector<16x128xf32> -> vector<16x128xf32>
    %cst_84 = arith.constant 9.99999993E-9 : f32
    %94 = vector.broadcast %cst_84 : f32 to vector<16x128xf32>
    %95 = arith.addf %93, %94 : vector<16x128xf32>
    %96 = math.rsqrt %95 : vector<16x128xf32>
    %97 = arith.mulf %91, %96 : vector<16x128xf32>
    %c0_85 = arith.constant 0 : index
    %c0_86 = arith.constant 0 : index
    %c0_87 = arith.constant 0 : index
    %98 = vector.load %arg8[%c0_85, %c0_86, %c0_87] : memref<1x16x128xf32, #tpu.memory_space<vmem>>, vector<1x16x128xf32>
    %99 = vector.shape_cast %98 : vector<1x16x128xf32> to vector<16x128xf32>
    %100 = vector.shape_cast %97 : vector<16x128xf32> to vector<1x16x128xf32>
    tpu.vector_store %arg8[%c0_85, %c0_86, %c0_87], %100 {strides = array<i32>} : memref<1x16x128xf32, #tpu.memory_space<vmem>>, vector<1x16x128xf32>,
    return
  }
  func.func @transform_0(%arg0: i32) -> (i32, i32, i32) {
    %c0_i32 = arith.constant 0 : i32
    %c0_i32_0 = arith.constant 0 : i32
    %c0_i32_1 = arith.constant 0 : i32
    return %arg0, %c0_i32, %c0_i32_0 : i32, i32, i32
  }
  func.func @transform_1(%arg0: i32) -> (i32, i32) {
    %c0_i32 = arith.constant 0 : i32
    %c0_i32_0 = arith.constant 0 : i32
    %c0_i32_1 = arith.constant 0 : i32
    return %c0_i32, %c0_i32_0 : i32, i32
  }
  func.func @transform_2(%arg0: i32) -> (i32, i32) {
    %c0_i32 = arith.constant 0 : i32
    %c0_i32_0 = arith.constant 0 : i32
    %c0_i32_1 = arith.constant 0 : i32
    return %c0_i32, %c0_i32_0 : i32, i32
  }
  func.func @transform_3(%arg0: i32) -> (i32, i32) {
    %c0_i32 = arith.constant 0 : i32
    %c0_i32_0 = arith.constant 0 : i32
    %c0_i32_1 = arith.constant 0 : i32
    return %c0_i32, %c0_i32_0 : i32, i32
  }
  func.func @transform_4(%arg0: i32) -> (i32, i32, i32) {
    %c0_i32 = arith.constant 0 : i32
    %c0_i32_0 = arith.constant 0 : i32
    %c0_i32_1 = arith.constant 0 : i32
    %c0_i32_2 = arith.constant 0 : i32
    return %c0_i32, %c0_i32_0, %c0_i32_1 : i32, i32, i32
  }
  func.func @transform_5(%arg0: i32) -> (i32, i32, i32) {
    %c0_i32 = arith.constant 0 : i32
    %c0_i32_0 = arith.constant 0 : i32
    %c0_i32_1 = arith.constant 0 : i32
    %c0_i32_2 = arith.constant 0 : i32
    return %c0_i32, %c0_i32_0, %c0_i32_1 : i32, i32, i32
  }
  func.func @transform_6(%arg0: i32) -> (i32, i32) {
    %c0_i32 = arith.constant 0 : i32
    %c0_i32_0 = arith.constant 0 : i32
    %c0_i32_1 = arith.constant 0 : i32
    return %c0_i32, %c0_i32_0 : i32, i32
  }
  func.func @transform_7(%arg0: i32) -> (i32, i32, i32) {
    %c0_i32 = arith.constant 0 : i32
    %c0_i32_0 = arith.constant 0 : i32
    %c0_i32_1 = arith.constant 0 : i32
    return %arg0, %c0_i32, %c0_i32_0 : i32, i32, i32
  }
}

</mosaic_0001>

<bundles_post_ra>
// kernel: tpu_custom_call.1
= control target key start
LH: loop header
LB: loop body
LE: loop exit
PB: predicated region body
PF: predicated region fallthrough
CT: control target
= control target key end

     0   :  { %s4629_s0 = inlined_call_operand.hbm [shape: f32[2,1,32], index: 0, kind: input, shape index: {}]   ;;  %s4630_s1 = inlined_call_operand.hbm [shape: f32[32,2048], index: 1, kind: input, shape index: {}]   ;;  %s4631_s2 = inlined_call_operand.hbm [shape: f32[1,2048], index: 2, kind: input, shape index: {}]   ;;  %s4632_s3 = inlined_call_operand.hbm [shape: f32[128,128], index: 3, kind: input, shape index: {}]   ;;  %s4633_s4 = inlined_call_operand.hbm [shape: f32[9,16,16], index: 4, kind: input, shape index: {}]   ;;  %s4634_s5 = inlined_call_operand.hbm [shape: f32[9,128,128], index: 5, kind: input, shape index: {}]   ;;  %s4635_s6 = inlined_call_operand.vmem [shape: f32[1,128], index: 6, kind: input, shape index: {}]   ;;  %s4636_s7 = inlined_call_operand.hbm [shape: f32[2,16,128], index: 7, kind: output, shape index: {}]  }
   0x1   :  { %4641 = sst [smem:[#allocation19_spill]] %s4630_s1 }
   0x2   :  { %4642 = sst [smem:[#allocation20_spill]] %s4631_s2 }
   0x3   :  { %12 = vsyncpa [#allocation3], 0 }
   0x4   :  { %14 = vsyncpa [#allocation3 + $0x1], 0 }
   0x5   :  { %15 = vsyncpa [#allocation6], 0 }
   0x6   :  { %16 = vsyncpa [#allocation9], 0 }
   0x7   :  { %17 = vsyncpa [#allocation12], 0 }
   0x8   :  { %18 = vsyncpa [#allocation4], 0 }
   0x9   :  { %20 = vsyncpa [#allocation4 + $0x1], 0  ;;  %s4281_s24 = smov 0   ;;  %s4283_s25 = smov 0  }
   0xa   :  { %s4285_s26 = smov 0   ;;  %s4287_s27 = smov 0  }
   0xb LB: > { %s4227_s28 = smov [#allocation5]   ;;  %s4302_s30 = sadd.s32 4294967295, %s4225_s27   ;;  %s4225_s27 = sphi %s4287_s27, %s4668_s27   ;;  %s4221_s26 = sphi %s4285_s26, %s4667_s26   ;;  %s4217_s25 = sphi %s4283_s25, %s4666_s25   ;;  %s4213_s24 = sphi %s4281_s24, %s4665_s24  }
   0xc   : > { %s221_s29 = sshll.u32 %s4227_s28, 4  ;;  %p3133_p0 = scmp.ge.s32.totalorder %s4225_s27, 1  ;;  %s222_s29 = int_to_ptr.vmem [resolvable:$true] %s221_s29 }
   0xd   : > { %p4637_p1 = scmp.eq.s32.totalorder %s4302_s30, 0  ;;  %p209_p2 = scmp.lt.s32.totalorder %s4225_s27, 3 }
   0xe   : > { %s4228_s9 = smov [#allocation8]   ;;  %s4229_s12 = smov [#allocation7]  }
   0xf   : > { %p4307_p3 = pnand %p3133_p0, %p209_p2  ;;  %s245_s10 = sshll.u32 %s4228_s9, 4  ;;  %s4320_s10 = int_to_ptr.vmem [resolvable:$true] %s245_s10 }
  0x10   : > { %s235_s13 = sshll.u32 %s4229_s12, 4  ;;  %s4002_s15 = scalar_lea.vmem %s222_s29, 8192  ;;  %s236_s13 = int_to_ptr.vmem [resolvable:$true] %s235_s13 }
  0x11   : > { %s4643_s8 = scalar_select %p4307_p3, 1, 0 }
  0x12   : > { %p3887_p5 = pneg %p4307_p3  ;;  %p4003_p8 = scmp.ne.s32.totalorder %s222_s29, %s4002_s15 }
  0x13   : > { %p4010_p11 = scmp.lt.s32.totalorder %s222_s29, %s222_s29  ;;  %p4011_p12 = scmp.lt.s32.totalorder %s4002_s15, %s4002_s15 }
  0x14   : > { %p4316_p6 = pnand %p3887_p5, %p4637_p1 }
  0x15   : > { %p4012_p13 = por %p4011_p12, %p4010_p11 }
  0x16   : > { %p4324_p7 = pneg %p4316_p6 }
  0x18   : > { %p4005_p9 = pnand %p4003_p8, %p4324_p7 }
  0x1a   : > { %p4006_p10 = pneg %p4005_p9 }
  0x1c   : > { %p4013_p0 = pnand %p4012_p13, %p4006_p10 }
  0x1e   : > { %4016 = shalt.err (!%p4013_p0)
}
  0x1f   : > { %s4230_s16 = smov 2048   ;;  %s4231_s17 = smov 128  }
  0x20   : > { %s4646_s1 = sld [smem:[#allocation19_spill]]  ;;  %s4028_s20 = scalar_lea.vmem %s4320_s10, 2048 }
  0x21   : > { %p4029_p2 = scmp.ne.s32.totalorder %s4320_s10, %s4028_s20  ;;  %p4036_p9 = scmp.lt.s32.totalorder %s4320_s10, %s4320_s10 }
  0x22   : > { %p4037_p10 = scmp.lt.s32.totalorder %s4028_s20, %s4028_s20 }
  0x23   : > { %p4031_p5 = pnand %p4029_p2, %p4324_p7 }
  0x24   : > { %p4038_p11 = por %p4037_p10, %p4036_p9 }
  0x25   : > { %p4032_p8 = pneg %p4031_p5 }
  0x26   : > { %3890 = dma.hbm_to_vmem [thread:$0]  (!%p4316_p6), %s4646_s1, 8192, %s222_s29, [#allocation6], %s4230_s16, %s4230_s16, %s4231_s17  }
  0x27   : > { %p4039_p12 = pnand %p4038_p11, %p4032_p8 }
  0x29   : > { %4042 = shalt.err (!%p4039_p12)
}
  0x2a   : > { %s4232_s21 = smov 8   ;;  %s4233_s28 = smov [#allocation10]  }
  0x2b   : > { %3896 = dma.hbm_to_vmem [thread:$0]  (!%p4316_p6), %s4632_s3, 2048, %s4320_s10, [#allocation9], %s4231_s17, %s4231_s17, %s4232_s21  }
  0x2c   : > { %s258_s29 = sshll.u32 %s4233_s28, 4  ;;  %s4054_s9 = scalar_lea.vmem %s236_s13, 256  ;;  %s259_s29 = int_to_ptr.vmem [resolvable:$true] %s258_s29 }
  0x2d   : > { %p4055_p13 = scmp.ne.s32.totalorder %s236_s13, %s4054_s9  ;;  %p4062_p5 = scmp.lt.s32.totalorder %s236_s13, %s236_s13 }
  0x2e   : > { %p4063_p8 = scmp.lt.s32.totalorder %s4054_s9, %s4054_s9 }
  0x2f   : > { %p4057_p0 = pnand %p4055_p13, %p4324_p7 }
  0x30   : > { %p4064_p9 = por %p4063_p8, %p4062_p5 }
  0x31   : > { %p4058_p2 = pneg %p4057_p0 }
  0x33   : > { %p4065_p10 = pnand %p4064_p9, %p4058_p2 }
  0x35   : > { %4068 = shalt.err (!%p4065_p10)
}
  0x36   : > { %s4647_s2 = sld [smem:[#allocation20_spill]]  ;;  %s4080_s10 = scalar_lea.vmem %s259_s29, 2304 }
  0x37   : > { %p4081_p11 = scmp.ne.s32.totalorder %s259_s29, %s4080_s10  ;;  %p4088_p13 = scmp.lt.s32.totalorder %s259_s29, %s259_s29 }
  0x38   : > { %p4089_p0 = scmp.lt.s32.totalorder %s4080_s10, %s4080_s10 }
  0x39   : > { %p4083_p12 = pnand %p4081_p11, %p4324_p7 }
  0x3a   : > { %p4090_p1 = por %p4089_p0, %p4088_p13 }
  0x3b   : > { %p4084_p4 = pneg %p4083_p12 }
  0x3c   : > { %3893 = dma.hbm_to_vmem [thread:$0]  (!%p4316_p6), %s4647_s2, 256, %s236_s13, [#allocation6]  }
  0x3d   : > { %p4091_p3 = pnand %p4090_p1, %p4084_p4 }
  0x3f   : > { %4094 = shalt.err (!%p4091_p3)
}
  0x40   : > { %3899 = dma.hbm_to_vmem [thread:$0]  (!%p4316_p6), %s4633_s4, 2304, %s259_s29, [#allocation9], %s4231_s17, %s4231_s17, %s4232_s21  }
  0x41   : > { %s4234_s13 = smov [#allocation11]  }
  0x42   : > { %s271_s19 = sshll.u32 %s4234_s13, 4  ;;  %s272_s19 = int_to_ptr.vmem [resolvable:$true] %s271_s19 }
  0x43   : > { %s4106_s20 = scalar_lea.vmem %s272_s19, 18432  ;;  %p4114_p1 = scmp.lt.s32.totalorder %s272_s19, %s272_s19 }
  0x44   : > { %p4107_p2 = scmp.ne.s32.totalorder %s272_s19, %s4106_s20  ;;  %p4115_p3 = scmp.lt.s32.totalorder %s4106_s20, %s4106_s20 }
  0x46   : > { %p4109_p5 = pnand %p4107_p2, %p4324_p7  ;;  %p4116_p4 = por %p4115_p3, %p4114_p1 }
  0x48   : > { %p4110_p8 = pneg %p4109_p5 }
  0x4a   : > { %p4117_p9 = pnand %p4116_p4, %p4110_p8 }
  0x4c   : > { %4120 = shalt.err (!%p4117_p9)
}
  0x4d   : > { %3902 = dma.hbm_to_vmem [thread:$0]  (!%p4316_p6), %s4634_s5, 18432, %s272_s19, [#allocation12], %s4231_s17, %s4231_s17, %s4232_s21  }
  0x4e   : > { %s3132_s11 = sadd.s32 4294967294, %s4225_s27   ;;  %s4380_s14 = sadd.s32 1, %s4225_s27  }
  0x4f   : > { %s30_s28 = ssub.s32 %s4225_s27, %s4380_s14  ;;  %s33_s29 = sadd.s32 1, %s4221_s26 }
  0x50   : > { %p31_p7 = scmp.eq.s32.totalorder %s30_s28, 0  ;;  %p40_p10 = scmp.ne.s32.totalorder %s4221_s26, %s4217_s25 }
  0x51   : > { %p41_p11 = scmp.eq.s32.totalorder %s4225_s27, 0  ;;  %p46_p12 = scmp.ne.s32.totalorder %s4217_s25, %s4213_s24 }
  0x52   : > { %s4391_s9 = scalar_select %p31_p7, %s4221_s26, %s33_s29  }
  0x53   : > { %p4393_p13 = por %p41_p11, %p40_p10  ;;  %p4649_p0 = scmp.eq.s32.totalorder %s4302_s30, 0 }
  0x54   : > { %p196_p2 = scmp.eq.s32.totalorder %s4302_s30, 1  ;;  %p202_p5 = scmp.eq.s32.totalorder %s3132_s11, 1 }
  0x55   : > { %p4399_p6 = por %p4649_p0, %p46_p12  ;;  %p3916_p8 = scmp.lt.s32.totalorder %s4225_s27, 2 }
  0x56   : > { %s288_s21 = sand.u32 1, %s4221_s26   ;;  %p4406_p1 = por %p196_p2, %p40_p10 }
  0x57   : > { %s4650_s17 = scalar_select %p4399_p6, 1, 0 }
  0x58   : > { %s4651_s15 = scalar_select %p4406_p1, 1, 0 }
  0x59   : > { %p4410_p3 = por %p202_p5, %p46_p12  ;;  %s3140_s16 = sshll.u32 %s4225_s27, 4 }
  0x5a   : > { %s291_s18 = scalar_lea.vmem [#allocation2], %s288_s21  ;;  %s4418_s22 = scalar_lea.hbm %s4629_s0, %s3140_s16 }
  0x5b   : > { %s4652_s10 = scalar_select %p4410_p3, 1, 0 }
  0x5c   : > { %s298_s13 = sshll.u32 %s291_s18, 4  ;;  %p4422_p4 = pnand %p3916_p8, %p4393_p13  ;;  %s299_s13 = int_to_ptr.vmem [resolvable:$true] %s298_s13 }
  0x5d   : > { %s289_s11 = scalar_lea.sflag [#allocation3], %s288_s21  ;;  %s4121_s28 = scalar_lea.hbm %s4418_s22, 16 }
  0x5e   : > { %p4122_p9 = scmp.ne.s32.totalorder %s4418_s22, %s4121_s28  ;;  %p4123_p7 = pneg %p4422_p4 }
  0x5f   : > { %s4126_s18 = scalar_lea.hbm %s4629_s0, 32  ;;  %p4127_p12 = scmp.lt.s32.totalorder %s4418_s22, %s4629_s0 }
  0x60   : > { %p4124_p10 = pnand %p4123_p7, %p4122_p9  ;;  %p4128_p13 = scmp.lt.s32.totalorder %s4126_s18, %s4121_s28 }
  0x62   : > { %p4125_p11 = pneg %p4124_p10  ;;  %p4129_p0 = por %p4128_p13, %p4127_p12 }
  0x64   : > { %p4130_p2 = pnand %p4129_p0, %p4125_p11 }
  0x66   : > { %4133 = shalt.err (!%p4130_p2)
}
  0x67   : > { %s4134_s12 = scalar_lea.vmem %s299_s13, 16  ;;  %s4235_s21 = smov [#allocation2]  }
  0x68   : > { %p4135_p5 = scmp.ne.s32.totalorder %s299_s13, %s4134_s12  ;;  %s4139_s1 = sshll.u32 %s4235_s21, 4  ;;  %s4140_s1 = int_to_ptr.vmem [resolvable:$false] %s4139_s1 }
  0x69   : > { %s4141_s2 = scalar_lea.vmem %s4140_s1, 32  ;;  %p4142_p9 = scmp.lt.s32.totalorder %s299_s13, %s4140_s1 }
  0x6a   : > { %p4137_p8 = pnand %p4135_p5, %p4123_p7  ;;  %p4143_p10 = scmp.lt.s32.totalorder %s4141_s2, %s4134_s12 }
  0x6c   : > { %p4138_p3 = pneg %p4137_p8  ;;  %p4144_p1 = por %p4143_p10, %p4142_p9 }
  0x6e   : > { %p4145_p6 = pnand %p4144_p1, %p4138_p3 }
  0x70   : > { %4148 = shalt.err (!%p4145_p6)
}
  0x71   : > { %3906 = dma.hbm_to_vmem [thread:$0]  (!%p4422_p4), %s4418_s22, 16, %s299_s13, %s289_s11  }
  0x72   : > { %p4654_p11 = scmp.ne.s32.totalorder %s4643_s8, 0 }
  0x73   : > { %s4443_s28 = sand.u32 (!%p4654_p11), 1, %s4217_s25   ;;  %p4655_p7 = scmp.ne.s32.totalorder (!%p4654_p11), %s4650_s17, 0 }
  0x74   : > { %307 = sbr.rel (%p4654_p11) target bundleno = 2040 (0x7f8), region = 48  ;;  %s310_s29 = scalar_lea.sflag (!%p4654_p11), [#allocation3], %s4443_s28 }
  0x75   : > { %s312_s16 = scalar_lea.vmem (!%p4654_p11), [#allocation2], %s4443_s28 }
  0x79   : > { %4192 = dma.done.wait (%p4655_p7), %s310_s29, 16  }
  0x7a   : > { %4194 = vsyncadd (%p4655_p7), %s310_s29, 4294967280  ;;  %p4656_p6 = scmp.eq.s32.totalorder %s4302_s30, 0 }
  0x7c   : > { %4196 = dma.done.wait (%p4656_p6), [#allocation6], 8448   ;;  %p4657_p1 = pmov %p4656_p6 }
  0x7e   : > { %4198 = vsyncadd (%p4657_p1), [#allocation6], 4294958848  ;;  %p4658_p3 = pmov %p4657_p1 }
  0x7f   : > { %p4659_p4 = pmov %p4657_p1 }
  0x80   : > { %4200 = dma.done.wait (%p4658_p3), [#allocation9], 4352  }
  0x81   : > { %4202 = vsyncadd (%p4659_p4), [#allocation9], 4294962944  ;;  %p4660_p12 = pmov %p4657_p1 }
  0x82   : > { %p4661_p13 = pmov %p4657_p1 }
  0x83   : > { %4204 = dma.done.wait (%p4660_p12), [#allocation12], 18432  }
  0x84   : > { %4206 = vsyncadd (%p4661_p13), [#allocation12], 4294948864  ;;  %v4236_v0 = vmov 0.0   ;;  %v412_v1 = vld [vmem:[#allocation5 + $0x188] sm:$0xff]  ;;  %v411_v2 = vld [vmem:[#allocation5 + $0x180] sm:$0xff]  ;;  %vm511_vm0 = vcmask 261120  }
  0x85   : > { %579 = vmatprep.mubr.f32.mxu1 %v4236_v0  ;;  %863 = vmatprep.mubr.f32.mxu0 %v4236_v0  ;;  %v396_v3 = vld [vmem:[#allocation5 + $0x108] sm:$0xff]  ;;  %v395_v4 = vld [vmem:[#allocation5 + $0x100] sm:$0xff]  ;;  %v4465_v9 = vld [vmem:[%s312_s16] sm:$0x1]  ;;  %vm1312_vm3 = vcmask 130048   ;;  %s3147_s8 = sshll.u32 %s4443_s28, 4 }
  0x86   : > { %539 = vmatprep.subr.mxu1 %v412_v1  ;;  %v380_v5 = vld [vmem:[#allocation5 + $0x88] sm:$0xff]  ;;  %v379_v6 = vld [vmem:[#allocation5 + $0x80] sm:$0xff]  ;;  %v414_v10 = vld [vmem:[#allocation5 + $0x198] sm:$0xff]  ;;  %s3180_s17 = sshll.u32 %s4302_s30, 8  ;;  %s361_s13 = scalar_lea.vmem [#allocation13], %s3147_s8 }
  0x87   : > { %540 = vmatpush1.msra.mxu1 %v411_v2  ;;  %v364_v7 = vld [vmem:[#allocation5 + $0x8] sm:$0xff]  ;;  %v363_v8 = vld [vmem:[#allocation5] sm:$0xff]  ;;  %v413_v11 = vld [vmem:[#allocation5 + $0x190] sm:$0xff]  ;;  %s3014_s22 = sshll.u32 %s361_s13, 4  ;;  %s4584_s18 = scalar_lea.hbm %s4636_s7, %s3180_s17  ;;  %s4586_s22 = int_to_ptr.vmem [resolvable:$true] %s3014_s22 }
  0x88   : > { %541 = vmatprep.subr.mxu1 %v396_v3  ;;  %v398_v12 = vld [vmem:[#allocation5 + $0x118] sm:$0xff]  ;;  %v397_v13 = vld [vmem:[#allocation5 + $0x110] sm:$0xff]  ;;  %v420_v15 = vld [vmem:[#allocation5 + $0x1c8] sm:$0xff]  ;;  %s3001_s19 = scalar_lea.sflag [#allocation4], %s4443_s28  ;;  %s4149_s30 = scalar_lea.vmem %s4586_s22, 256 }
  0x89   : > { %542 = vmatpush1.msra.mxu1 %v395_v4  ;;  %v382_v14 = vld [vmem:[#allocation5 + $0x98] sm:$0xff]  ;;  %v381_v16 = vld [vmem:[#allocation5 + $0x90] sm:$0xff]  ;;  %823 = vmatprep.subr.mxu0 %v420_v15  ;;  %v419_v17 = vld [vmem:[#allocation5 + $0x1c0] sm:$0xff]  ;;  %p4150_p0 = scmp.ne.s32.totalorder %s4586_s22, %s4149_s30  ;;  %p4662_p2 = scmp.ne.s32.totalorder %s4651_s15, 0 }
  0x8a   : > { %543 = vmatprep.subr.mxu1 %v380_v5  ;;  %v404_v18 = vld [vmem:[#allocation5 + $0x148] sm:$0xff]  ;;  %v366_v19 = vld [vmem:[#allocation5 + $0x18] sm:$0xff]  ;;  %824 = vmatpush1.msra.mxu0 %v419_v17  ;;  %v403_v20 = vld [vmem:[#allocation5 + $0x140] sm:$0xff]  ;;  %s4238_s20 = smov [#allocation13]  }
  0x8b   : > { %544 = vmatpush1.msra.mxu1 %v379_v6  ;;  %v365_v21 = vld [vmem:[#allocation5 + $0x10] sm:$0xff]  ;;  %825 = vmatprep.subr.mxu0 %v404_v18  ;;  %v388_v22 = vld [vmem:[#allocation5 + $0xc8] sm:$0xff]  ;;  %v387_v23 = vld [vmem:[#allocation5 + $0xc0] sm:$0xff]  ;;  %p4151_p5 = pnand %p4150_p0, %p4662_p2  ;;  %s4153_s12 = sshll.u32 %s4238_s20, 4  ;;  %s4154_s12 = int_to_ptr.vmem [resolvable:$false] %s4153_s12 }
  0x8c   : > { %545 = vmatprep.subr.mxu1 %v364_v7  ;;  %v416_v24 = vld [vmem:[#allocation5 + $0x1a8] sm:$0xff]  ;;  %826 = vmatpush1.msra.mxu0 %v403_v20  ;;  %v415_v25 = vld [vmem:[#allocation5 + $0x1a0] sm:$0xff]  ;;  %v418_v37 = vld [vmem:[#allocation5 + $0x1b8] sm:$0xff]  ;;  %s4155_s21 = scalar_lea.vmem %s4154_s12, 512  ;;  %p4156_p9 = scmp.lt.s32.totalorder %s4586_s22, %s4154_s12 }
  0x8d   : > { %546 = vmatpush1.msra.mxu1 %v363_v8  ;;  %827 = vmatprep.subr.mxu0 %v388_v22  ;;  %v400_v26 = vld [vmem:[#allocation5 + $0x128] sm:$0xff]  ;;  %v399_v28 = vld [vmem:[#allocation5 + $0x120] sm:$0xff]  ;;  %v417_v38 = vld [vmem:[#allocation5 + $0x1b0] sm:$0xff]  ;;  %p4152_p8 = pneg %p4151_p5  ;;  %p4157_p10 = scmp.lt.s32.totalorder %s4155_s21, %s4149_s30 }
  0x8e   : > { %3148 = vmatmul.mubr.msk.f32.vlgmr.msra.gmra.mxu1 %vm511_vm0, %v4465_v9  ;;  %610 = vmatprep.subr.mxu1 %v414_v10  ;;  %v372_v27 = vld [vmem:[#allocation5 + $0x48] sm:$0xff]  ;;  %v371_v29 = vld [vmem:[#allocation5 + $0x40] sm:$0xff]  ;;  %v402_v39 = vld [vmem:[#allocation5 + $0x138] sm:$0xff] }
  0x8f   : > { %611 = vmatpush1.msra.mxu1 %v413_v11  ;;  %650 = vmatprep.mubr.f32.mxu1 %v4236_v0  ;;  %v384_v30 = vld [vmem:[#allocation5 + $0xa8] sm:$0xff]  ;;  %v383_v32 = vld [vmem:[#allocation5 + $0xa0] sm:$0xff]  ;;  %v401_v41 = vld [vmem:[#allocation5 + $0x130] sm:$0xff]  ;;  %p4158_p11 = por %p4157_p10, %p4156_p9 }
  0x90   : > { %612 = vmatprep.subr.mxu1 %v398_v12  ;;  %828 = vmatpush1.msra.mxu0 %v387_v23  ;;  %v424_v31 = vld [vmem:[#allocation5 + $0x1e8] sm:$0xff]  ;;  %v423_v34 = vld [vmem:[#allocation5 + $0x1e0] sm:$0xff]  ;;  %v386_v43 = vld [vmem:[#allocation5 + $0xb8] sm:$0xff] }
  0x91   : > { %613 = vmatpush1.msra.mxu1 %v397_v13  ;;  %829 = vmatprep.subr.mxu0 %v372_v27  ;;  %v368_v33 = vld [vmem:[#allocation5 + $0x28] sm:$0xff]  ;;  %v367_v35 = vld [vmem:[#allocation5 + $0x20] sm:$0xff]  ;;  %v385_v45 = vld [vmem:[#allocation5 + $0xb0] sm:$0xff]  ;;  %p4159_p7 = pnand %p4158_p11, %p4152_p8 }
  0x92   : > { %614 = vmatprep.subr.mxu1 %v382_v14  ;;  %830 = vmatpush1.msra.mxu0 %v371_v29  ;;  %v408_v36 = vld [vmem:[#allocation5 + $0x168] sm:$0xff]  ;;  %v407_v40 = vld [vmem:[#allocation5 + $0x160] sm:$0xff]  ;;  %v370_v47 = vld [vmem:[#allocation5 + $0x38] sm:$0xff] }
  0x93   : > { %615 = vmatpush1.msra.mxu1 %v381_v16  ;;  %965 = vmatprep.subr.mxu0 %v424_v31  ;;  %v392_v42 = vld [vmem:[#allocation5 + $0xe8] sm:$0xff]  ;;  %v391_v44 = vld [vmem:[#allocation5 + $0xe0] sm:$0xff]  ;;  %v369_v49 = vld [vmem:[#allocation5 + $0x30] sm:$0xff] }
  0x94   : > { %616 = vmatprep.subr.mxu1 %v366_v19  ;;  %3152 = vmatmul.mubr.msk.f32.vlgmr.msra.gmra.mxu0 %vm511_vm0, %v4465_v9  ;;  %v376_v46 = vld [vmem:[#allocation5 + $0x68] sm:$0xff]  ;;  %v375_v48 = vld [vmem:[#allocation5 + $0x60] sm:$0xff]  ;;  %v422_v50 = vld [vmem:[#allocation5 + $0x1d8] sm:$0xff]  ;;  %v431_v19 = vlaneseq }
  0x95   : > { %617 = vmatpush1.msra.mxu1 %v365_v21  ;;  %966 = vmatpush1.msra.mxu0 %v423_v34  ;;  %v421_v51 = vld [vmem:[#allocation5 + $0x1d0] sm:$0xff]  ;;  %v406_v52 = vld [vmem:[#allocation5 + $0x158] sm:$0xff]  ;;  %v1214_v3 = vld [vmem:[#allocation8 + $0x78] sm:$0xff] }
  0x96   : > { %3149 = vmatmul.mubr.msk.f32.vlgmr.msra.gmra.mxu1 %vm511_vm0, %v4465_v9  ;;  %681 = vmatprep.subr.mxu1 %v416_v24  ;;  %v405_v53 = vld [vmem:[#allocation5 + $0x150] sm:$0xff]  ;;  %v390_v54 = vld [vmem:[#allocation5 + $0xd8] sm:$0xff]  ;;  %v1213_v4 = vld [vmem:[#allocation8 + $0x70] sm:$0xff]  ;;  %v4489_v21 = vshrl.u32 %v431_v19, 7 }
  0x97   : > { %682 = vmatpush1.msra.mxu1 %v415_v25  ;;  %721 = vmatprep.mubr.f32.mxu1 %v4236_v0  ;;  %v389_v55 = vld [vmem:[#allocation5 + $0xd0] sm:$0xff]  ;;  %v374_v56 = vld [vmem:[#allocation5 + $0x58] sm:$0xff]  ;;  %v1210_v6 = vld [vmem:[#allocation8 + $0x58] sm:$0xff] }
  0x98   : > { %683 = vmatprep.subr.mxu1 %v400_v26  ;;  %967 = vmatprep.subr.mxu0 %v408_v36  ;;  %v373_v57 = vld [vmem:[#allocation5 + $0x50] sm:$0xff]  ;;  %v426_v58 = vld [vmem:[#allocation5 + $0x1f8] sm:$0xff]  ;;  %v1209_v7 = vld [vmem:[#allocation8 + $0x50] sm:$0xff]  ;;  %v441_v23 = vsub.s32 2, %v4489_v21  ;;  %v445_v24 = vsub.s32 3, %v4489_v21  ;;  %v433_v25 = vsub.s32 0, %v4489_v21 }
  0x99   : > { %684 = vmatpush1.msra.mxu1 %v399_v28  ;;  %968 = vmatpush1.msra.mxu0 %v407_v40  ;;  %v425_v59 = vld [vmem:[#allocation5 + $0x1f0] sm:$0xff]  ;;  %v410_v60 = vld [vmem:[#allocation5 + $0x178] sm:$0xff]  ;;  %v1206_v10 = vld [vmem:[#allocation8 + $0x38] sm:$0xff]  ;;  %v437_v26 = vsub.s32 1, %v4489_v21  ;;  %v449_v29 = vsub.s32 4, %v4489_v21 }
  0x9a   : > { %685 = vmatprep.subr.mxu1 %v384_v30  ;;  %969 = vmatprep.subr.mxu0 %v392_v42  ;;  %v409_v61 = vld [vmem:[#allocation5 + $0x170] sm:$0xff]  ;;  %v394_v62 = vld [vmem:[#allocation5 + $0xf8] sm:$0xff]  ;;  %v1205_v11 = vld [vmem:[#allocation8 + $0x30] sm:$0xff]  ;;  %v4237_v36 = vmov 1966171168  }
  0x9b   : > { %686 = vmatpush1.msra.mxu1 %v383_v32  ;;  %970 = vmatpush1.msra.mxu0 %v391_v44  ;;  %v393_v63 = vld [vmem:[#allocation5 + $0xf0] sm:$0xff]  ;;  %v378_v1 = vld [vmem:[#allocation5 + $0x78] sm:$0xff]  ;;  %v1202_v14 = vld [vmem:[#allocation8 + $0x18] sm:$0xff]  ;;  %v453_v32 = vsub.s32 5, %v4489_v21 }
  0x9c   : > { %687 = vmatprep.subr.mxu1 %v368_v33  ;;  %971 = vmatprep.subr.mxu0 %v376_v46  ;;  %v377_v2 = vld [vmem:[#allocation5 + $0x70] sm:$0xff]  ;;  %v1212_v5 = vld [vmem:[#allocation8 + $0x68] sm:$0xff]  ;;  %v1201_v15 = vld [vmem:[#allocation8 + $0x10] sm:$0xff] }
  0x9d   : > { %688 = vmatpush1.msra.mxu1 %v367_v35  ;;  %972 = vmatpush1.msra.mxu0 %v375_v48  ;;  %v1208_v8 = vld [vmem:[#allocation8 + $0x48] sm:$0xff]  ;;  %v1203_v13 = vld [vmem:[#allocation8 + $0x20] sm:$0xff]  ;;  %v427_v27 = vld [vmem:[#allocation7] sm:$0xff] }
  0x9e   : > { %3150 = vmatmul.mubr.msk.f32.vlgmr.msra.gmra.mxu1 %vm511_vm0, %v4465_v9  ;;  %752 = vmatprep.subr.mxu1 %v418_v37  ;;  %v1204_v12 = vld [vmem:[#allocation8 + $0x28] sm:$0xff]  ;;  %v1199_v17 = vld [vmem:[#allocation8] sm:$0xff]  ;;  %v442_v30 = vrot.slane %v427_v27, %v441_v23  ;;  %v446_v31 = vrot.slane %v427_v27, %v445_v24  ;;  %v434_v34 = vrot.slane %v427_v27, %v433_v25  ;;  %v1104_v37 = vunpack.c.l.s4 %v4237_v36 }
  0x9f   : > { %753 = vmatpush1.msra.mxu1 %v417_v38  ;;  %792 = vmatprep.mubr.f32.mxu1 %v4236_v0  ;;  %v1200_v16 = vld [vmem:[#allocation8 + $0x8] sm:$0xff]  ;;  %v438_v35 = vrot.slane %v427_v27, %v437_v26  ;;  %v457_v38 = vsub.s32 6, %v4489_v21  ;;  %v454_v42 = vrot.slane %v427_v27, %v453_v32 }
  0xa0   : > { %754 = vmatprep.subr.mxu1 %v402_v39  ;;  %1005 = vmatprep.mubr.f32.mxu0 %v4236_v0  ;;  %v450_v39 = vrot.slane %v427_v27, %v449_v29 }
  0xa1   : > { %755 = vmatpush1.msra.mxu1 %v401_v41  ;;  %3154 = vmatmul.mubr.msk.f32.vlgmr.msra.gmra.mxu0 %vm511_vm0, %v4465_v9  ;;  %v458_v48 = vrot.slane %v427_v27, %v457_v38 }
  0xa2   : > { %756 = vmatprep.subr.mxu1 %v386_v43  ;;  %3415 = vmatprep.subr.mxu0 %v1214_v3  ;;  %v461_v43 = vsub.s32 7, %v4489_v21 }
  0xa3   : > { %757 = vmatpush1.msra.mxu1 %v385_v45  ;;  %3416 = vmatpush3.msra.mxu0 %v1214_v3 }
  0xa4   : > { %758 = vmatprep.subr.mxu1 %v370_v47  ;;  %3417 = vmatprep.subr.mxu0 %v1213_v4  ;;  %v1105_v47 = vunpack.c.0.s8 %v1104_v37 }
  0xa5   : > { %759 = vmatpush1.msra.mxu1 %v369_v49  ;;  %3418 = vmatpush3.msra.mxu0 %v1213_v4 }
  0xa6   : > { %3151 = vmatmul.mubr.msk.f32.vlgmr.msra.gmra.mxu1 %vm511_vm0, %v4465_v9  ;;  %894 = vmatprep.subr.mxu1 %v422_v50 }
  0xa7   : > { %895 = vmatpush1.msra.mxu1 %v421_v51  ;;  %934 = vmatprep.mubr.f32.mxu1 %v4236_v0 }
  0xa8   : > { %896 = vmatprep.subr.mxu1 %v406_v52  ;;  %3419 = vmatprep.subr.mxu0 %v1212_v5  ;;  %v462_v52 = vrot.slane %v427_v27, %v461_v43 }
  0xa9   : > { %897 = vmatpush1.msra.mxu1 %v405_v53  ;;  %3420 = vmatpush3.msra.mxu0 %v1212_v5 }
  0xaa   : > { %898 = vmatprep.subr.mxu1 %v390_v54 }
  0xab   : > { %899 = vmatpush1.msra.mxu1 %v389_v55  ;;  %v1108_v55 = vsub.s32 %v1105_v47, %v4489_v21 }
  0xac   : > { %900 = vmatprep.subr.mxu1 %v374_v56 }
  0xad   : > { %901 = vmatpush1.msra.mxu1 %v373_v57 }
  0xae   : > { %3153 = vmatmul.mubr.msk.f32.vlgmr.msra.gmra.mxu1 %vm511_vm0, %v4465_v9  ;;  %1036 = vmatprep.subr.mxu1 %v426_v58 }
  0xaf   : > { %1037 = vmatpush1.msra.mxu1 %v425_v59  ;;  %1076 = vmatprep.mubr.f32.mxu1 %v4236_v0  ;;  %v1211_v0 = vld [vmem:[#allocation8 + $0x60] sm:$0xff] }
  0xb0   : > { %1038 = vmatprep.subr.mxu1 %v410_v60  ;;  %3421 = vmatprep.subr.mxu0 %v1211_v0 }
  0xb1   : > { %1039 = vmatpush1.msra.mxu1 %v409_v61  ;;  %3422 = vmatpush3.msra.mxu0 %v1211_v0 }
  0xb2   : > { %1040 = vmatprep.subr.mxu1 %v394_v62  ;;  %3423 = vmatprep.subr.mxu0 %v1210_v6  ;;  %v428_v62 = vld [vmem:[#allocation7 + $0x8] sm:$0xff] }
  0xb3   : > { %1041 = vmatpush1.msra.mxu1 %v393_v63  ;;  %3424 = vmatpush3.msra.mxu0 %v1210_v6  ;;  %v474_v3 = vrot.slane %v428_v62, %v441_v23  ;;  %v470_v4 = vrot.slane %v428_v62, %v437_v26  ;;  %v490_v26 = vrot.slane %v428_v62, %v457_v38 }
  0xb4   : > { %1042 = vmatprep.subr.mxu1 %v378_v1  ;;  %3425 = vmatprep.subr.mxu0 %v1209_v7  ;;  %v494_v27 = vrot.slane %v428_v62, %v461_v43 }
  0xb5   : > { %1043 = vmatpush1.msra.mxu1 %v377_v2  ;;  %3426 = vmatpush3.msra.mxu0 %v1209_v7  ;;  %v466_v2 = vrot.slane %v428_v62, %v433_v25 }
  0xb6   : > { %3155 = vmatmul.mubr.msk.f32.vlgmr.msra.gmra.mxu1 %vm511_vm0, %v4465_v9  ;;  %3427 = vmatprep.subr.mxu0 %v1208_v8  ;;  %v1207_v9 = vld [vmem:[#allocation8 + $0x40] sm:$0xff] }
  0xb7   : > { %3428 = vmatpush3.msra.mxu0 %v1208_v8  ;;  %v478_v8 = vrot.slane %v428_v62, %v445_v24 }
  0xb8   : > { %3429 = vmatprep.subr.mxu0 %v1207_v9 }
  0xb9   : > { %3430 = vmatpush3.msra.mxu0 %v1207_v9 }
  0xba   : > { %3431 = vmatprep.subr.mxu0 %v1206_v10 }
  0xbb   : > { %3432 = vmatpush3.msra.mxu0 %v1206_v10 }
  0xbc   : > { %3433 = vmatprep.subr.mxu0 %v1205_v11 }
  0xbd   : > { %3434 = vmatpush3.msra.mxu0 %v1205_v11 }
  0xbe   : > { %3435 = vmatprep.subr.mxu0 %v1204_v12 }
  0xbf   : > { %3436 = vmatpush3.msra.mxu0 %v1204_v12 }
  0xc0   : > { %3437 = vmatprep.subr.mxu0 %v1203_v13 }
  0xc1   : > { %3438 = vmatpush3.msra.mxu0 %v1203_v13 }
  0xc2   : > { %3439 = vmatprep.subr.mxu0 %v1202_v14 }
  0xc3   : > { %3440 = vmatpush3.msra.mxu0 %v1202_v14 }
  0xc4   : > { %3441 = vmatprep.subr.mxu0 %v1201_v15 }
  0xc5   : > { %3442 = vmatpush3.msra.mxu0 %v1201_v15  ;;  %v482_v15 = vrot.slane %v428_v62, %v449_v29 }
  0xc6   : > { %3443 = vmatprep.subr.mxu0 %v1200_v16 }
  0xc7   : > { %3444 = vmatpush3.msra.mxu0 %v1200_v16  ;;  %v486_v16 = vrot.slane %v428_v62, %v453_v32  ;;  %v1489_v62 = vld [vmem:[#allocation10 + $0x18] sm:$0xff] }
  0xc8   : > { %3445 = vmatprep.subr.mxu0 %v1199_v17 }
  0xc9   : > { %3446 = vmatpush3.msra.mxu0 %v1199_v17 }
 0x14e   : > { %v581_v18 = vpop.f32.mrf.mxu1 }
 0x14f   : > { %v582_v45 = vadd.f32 %v581_v18, %v434_v34 }
 0x150   : > { %v583_v20 = vpop.f32.mrf.mxu1 }
 0x151   : > { %v584_v46 = vadd.f32 %v583_v20, %v438_v35 }
 0x153   : > { %v1099_v54 = vcombine.low %v582_v45, %v584_v46 }
 0x154   : > { %v865_v58 = vpop.f32.mrf.mxu0 }
 0x155   : > { %v1109_v63 = vrot.slane %v1099_v54, %v1108_v55  ;;  %v866_v12 = vadd.f32 %v865_v58, %v466_v2  ;;  %v1586_v2 = vld [vmem:[#allocation11 + $0xf0] sm:$0xff] }
 0x156   : > { %v652_v22 = vpop.f32.mrf.mxu1  ;;  %v867_v5 = vpop.f32.mrf.mxu0 }
 0x157   : > { %v653_v40 = vadd.f32 %v652_v22, %v442_v30  ;;  %v868_v13 = vadd.f32 %v867_v5, %v470_v4  ;;  %v1585_v4 = vld [vmem:[#allocation11 + $0xe8] sm:$0xff]  ;;  %v1406_v5 = vld [vmem:[#allocation11 + $0x60] sm:$0xff] }
 0x158   : > { %v654_v28 = vpop.f32.mrf.mxu1 }
 0x159   : > { %v655_v41 = vadd.f32 %v654_v28, %v446_v31  ;;  %v1148_v23 = vcombine.low %v866_v12, %v868_v13  ;;  %v1402_v12 = vld [vmem:[#allocation11 + $0x40] sm:$0xff] }
 0x15a   : > { %v1580_v13 = vld [vmem:[#allocation11 + $0xc0] sm:$0xff] }
 0x15b   : > { %v1100_v49 = vcombine.low %v653_v40, %v655_v41  ;;  %v1158_v34 = vrot.slane %v1148_v23, %v1108_v55  ;;  %v1575_v23 = vld [vmem:[#allocation11 + $0x98] sm:$0xff] }
 0x15d   : > { %v1116_v59 = vrot.slane %v1100_v49, %v1108_v55 }
 0x15e   : > { %v723_v33 = vpop.f32.mrf.mxu1 }
 0x15f   : > { %v724_v50 = vadd.f32 %v723_v33, %v450_v39  ;;  %v1131_v0 = vcombine.low %v1109_v63, %v1116_v59  ;;  %v1587_v63 = vld [vmem:[#allocation11 + $0xf8] sm:$0xff] }
 0x160   : > { %v725_v44 = vpop.f32.mrf.mxu1 }
 0x161   : > { %v726_v51 = vadd.f32 %v725_v44, %v454_v42  ;;  %v1007_v10 = vpop.f32.mrf.mxu0  ;;  %v1139_v17 = vrot.slane %v1131_v0, %v1108_v55  ;;  %v1584_v0 = vld [vmem:[#allocation11 + $0xe0] sm:$0xff] }
 0x162   : > { %v1008_v25 = vadd.f32 %v1007_v10, %v482_v15  ;;  %v1403_v10 = vld [vmem:[#allocation11 + $0x48] sm:$0xff]  ;;  %v1579_v15 = vld [vmem:[#allocation11 + $0xb8] sm:$0xff] }
 0x163   : > { %v1101_v60 = vcombine.low %v724_v50, %v726_v51  ;;  %v1009_v21 = vpop.f32.mrf.mxu0  ;;  %v1310_v50 = vld [vmem:[#allocation10] sm:$0xff]  ;;  %v1488_v51 = vld [vmem:[#allocation10 + $0x10] sm:$0xff] }
 0x164   : > { %v1010_v24 = vadd.f32 %v1009_v21, %v486_v16  ;;  %3454 = vmatprep.mubr.msk.f32.mxu1 %vm1312_vm3, %v1310_v50  ;;  %v1400_v16 = vld [vmem:[#allocation11 + $0x30] sm:$0xff]  ;;  %v1576_v21 = vld [vmem:[#allocation11 + $0xa0] sm:$0xff]  ;;  %v1759_v50 = vld [vmem:[#allocation11 + $0x148] sm:$0xff] }
 0x165   : > { %v1123_v6 = vrot.slane %v1101_v60, %v1108_v55  ;;  %v1311_v60 = vld [vmem:[#allocation10 + $0x8] sm:$0xff] }
 0x166   : > { %v794_v53 = vpop.f32.mrf.mxu1  ;;  %v1150_v36 = vcombine.low %v1008_v25, %v1010_v24  ;;  %v1396_v25 = vld [vmem:[#allocation11 + $0x10] sm:$0xff]  ;;  %v1394_v24 = vld [vmem:[#allocation11] sm:$0xff] }
 0x167   : > { %v795_v56 = vadd.f32 %v794_v53, %v458_v48 }
 0x168   : > { %v796_v57 = vpop.f32.mrf.mxu1  ;;  %v1172_v42 = vrot.slane %v1150_v36, %v1108_v55  ;;  %v1844_v36 = vld [vmem:[#allocation10 + $0x30] sm:$0xff] }
 0x169   : > { %v797_v61 = vadd.f32 %v796_v57, %v462_v52 }
 0x16b   : > { %v1102_v1 = vcombine.low %v795_v56, %v797_v61  ;;  %v1409_v61 = vld [vmem:[#allocation11 + $0x78] sm:$0xff] }
 0x16d   : > { %v1130_v7 = vrot.slane %v1102_v1, %v1108_v55  ;;  %v1408_v1 = vld [vmem:[#allocation11 + $0x70] sm:$0xff] }
 0x16e   : > { %v936_v9 = vpop.f32.mrf.mxu1 }
 0x16f   : > { %v1132_v11 = vcombine.low %v1123_v6, %v1130_v7  ;;  %v937_v19 = vadd.f32 %v936_v9, %v474_v3  ;;  %v1407_v3 = vld [vmem:[#allocation11 + $0x68] sm:$0xff]  ;;  %v1405_v6 = vld [vmem:[#allocation11 + $0x58] sm:$0xff]  ;;  %v1582_v9 = vld [vmem:[#allocation11 + $0xd0] sm:$0xff] }
 0x170   : > { %v938_v14 = vpop.f32.mrf.mxu1  ;;  %v1583_v7 = vld [vmem:[#allocation11 + $0xd8] sm:$0xff] }
 0x171   : > { %v1146_v18 = vrot.slane %v1132_v11, %v1108_v55  ;;  %v939_v20 = vadd.f32 %v938_v14, %v478_v8  ;;  %v1404_v8 = vld [vmem:[#allocation11 + $0x50] sm:$0xff]  ;;  %v1581_v11 = vld [vmem:[#allocation11 + $0xc8] sm:$0xff]  ;;  %v1401_v14 = vld [vmem:[#allocation11 + $0x38] sm:$0xff] }
 0x173   : > { %v1147_v22 = vcombine.low %v1139_v17, %v1146_v18  ;;  %v1149_v28 = vcombine.low %v937_v19, %v939_v20  ;;  %v1578_v17 = vld [vmem:[#allocation11 + $0xb0] sm:$0xff]  ;;  %v1399_v18 = vld [vmem:[#allocation11 + $0x28] sm:$0xff]  ;;  %v1398_v20 = vld [vmem:[#allocation11 + $0x20] sm:$0xff] }
 0x174   : > { %v1577_v19 = vld [vmem:[#allocation11 + $0xa8] sm:$0xff] }
 0x175   : > { %vm1215_vm1 = vcmp.ge.f32.partialorder %v1147_v22, 0.0  ;;  %v1217_v30 = vmul.f32 0.2, %v1147_v22  ;;  %v1165_v32 = vrot.slane %v1149_v28, %v1108_v55  ;;  %v1573_v28 = vld [vmem:[#allocation11 + $0x88] sm:$0xff] }
 0x176   : > { %v1078_v31 = vpop.f32.mrf.mxu1 }
 0x177   : > { %v1219_v33 = vsel %vm1215_vm1, %v1147_v22, %v1217_v30  ;;  %v1079_v37 = vadd.f32 %v1078_v31, %v490_v26  ;;  %v1180_v41 = vcombine.low %v1158_v34, %v1165_v32  ;;  %v1397_v22 = vld [vmem:[#allocation11 + $0x18] sm:$0xff]  ;;  %v1574_v26 = vld [vmem:[#allocation11 + $0x90] sm:$0xff]  ;;  %v1572_v30 = vld [vmem:[#allocation11 + $0x80] sm:$0xff] }
 0x178   : > { %v1080_v35 = vpop.f32.mrf.mxu1  ;;  %v1221_v29 = vmul.f32 %v1219_v33, %v1219_v33  ;;  %v1765_v32 = vld [vmem:[#allocation11 + $0x178] sm:$0xff] }
 0x179   : > { %v1081_v39 = vadd.f32 %v1080_v35, %v494_v27  ;;  %v1188_v43 = vrot.slane %v1180_v41, %v1108_v55  ;;  %v1395_v27 = vld [vmem:[#allocation11 + $0x8] sm:$0xff]  ;;  %v1764_v41 = vld [vmem:[#allocation11 + $0x170] sm:$0xff] }
 0x17a   : > { %3447 = vmatprep.mubr.f32.mxu0 %v1221_v29  ;;  %v1666_v29 = vld [vmem:[#allocation10 + $0x20] sm:$0xff] }
 0x17b   : > { %v1151_v40 = vcombine.low %v1079_v37, %v1081_v39  ;;  %v1943_v37 = vld [vmem:[#allocation11 + $0x1f8] sm:$0xff] }
 0x17c   : > { %v1667_v39 = vld [vmem:[#allocation10 + $0x28] sm:$0xff] }
 0x17d   : > { %v1179_v44 = vrot.slane %v1151_v40, %v1108_v55  ;;  %v1845_v40 = vld [vmem:[#allocation10 + $0x38] sm:$0xff] }
 0x17f   : > { %v1181_v38 = vcombine.low %v1172_v42, %v1179_v44  ;;  %v1942_v42 = vld [vmem:[#allocation11 + $0x1f0] sm:$0xff]  ;;  %v1763_v44 = vld [vmem:[#allocation11 + $0x168] sm:$0xff] }
 0x181   : > { %v1195_v45 = vrot.slane %v1181_v38, %v1108_v55  ;;  %v1941_v38 = vld [vmem:[#allocation11 + $0x1e8] sm:$0xff] }
 0x183   : > { %v1196_v46 = vcombine.low %v1188_v43, %v1195_v45  ;;  %v1762_v43 = vld [vmem:[#allocation11 + $0x160] sm:$0xff] }
 0x184   : > { %v1940_v45 = vld [vmem:[#allocation11 + $0x1e0] sm:$0xff] }
 0x185   : > { %vm1216_vm2 = vcmp.ge.f32.partialorder %v1196_v46, 0.0  ;;  %v1218_v47 = vmul.f32 0.2, %v1196_v46 }
 0x187   : > { %v1220_v48 = vsel %vm1216_vm2, %v1196_v46, %v1218_v47  ;;  %v1761_v46 = vld [vmem:[#allocation11 + $0x158] sm:$0xff] }
 0x188   : > { %v1222_v49 = vmul.f32 %v1220_v48, %v1220_v48  ;;  %v1939_v47 = vld [vmem:[#allocation11 + $0x1d8] sm:$0xff] }
 0x18a   : > { %3448 = vmatmul.mubr.f32.vlgmr.msra.gmra.mxu0 %v1222_v49  ;;  %v1938_v49 = vld [vmem:[#allocation11 + $0x1d0] sm:$0xff] }
 0x18b   : > { %3496 = vmatprep.mubr.msk.f32.mxu0 %vm1312_vm3, %v1488_v51  ;;  %v1937_v51 = vld [vmem:[#allocation11 + $0x1c8] sm:$0xff] }
 0x24a   : > { %v3449_v52 = vpop.f32.mrf.mxu0 }
 0x24b   : > { %v1295_v53 = vadd.f32 1e-08, %v3449_v52  ;;  %v1758_v52 = vld [vmem:[#allocation11 + $0x140] sm:$0xff] }
 0x24c   : > { %v1289_v54 = vpop.f32.mrf.mxu0 }
 0x24d   : > { %3967 = vrsqrt.f32 %v1295_v53  ;;  %v1290_v56 = vadd.f32 1e-08, %v1289_v54  ;;  %v1936_v53 = vld [vmem:[#allocation11 + $0x1c0] sm:$0xff]  ;;  %v1757_v54 = vld [vmem:[#allocation11 + $0x138] sm:$0xff] }
 0x24f   : > { %3969 = vrsqrt.f32 %v1290_v56  ;;  %v1935_v56 = vld [vmem:[#allocation11 + $0x1b8] sm:$0xff] }
 0x25a   : > { %v3968_v55 = vpop.eup %3967 }
 0x25b   : > { %v4502_v57 = vmul.f32 %v3968_v55, %v1220_v48  ;;  %v1760_v48 = vld [vmem:[#allocation11 + $0x150] sm:$0xff] }
 0x25c   : > { %v3970_v58 = vpop.eup %3969  ;;  %v1756_v55 = vld [vmem:[#allocation11 + $0x130] sm:$0xff] }
 0x25d   : > { %v4504_v59 = vmul.f32 %v3970_v58, %v1219_v33  ;;  %3450 = vmatprep.subr.mxu1 %v4502_v57  ;;  %3492 = vmatprep.subr.mxu0 %v4502_v57  ;;  %v1934_v58 = vld [vmem:[#allocation11 + $0x1b0] sm:$0xff] }
 0x25e   : > { %3451 = vmatpush3.msra.mxu1 %v4502_v57  ;;  %3493 = vmatpush3.msra.mxu0 %v4502_v57 }
 0x25f   : > { %3452 = vmatprep.subr.mxu1 %v4504_v59  ;;  %3494 = vmatprep.subr.mxu0 %v4504_v59 }
 0x260   : > { %3453 = vmatpush3.msra.mxu1 %v4504_v59  ;;  %3495 = vmatpush3.msra.mxu0 %v4504_v59 }
 0x261   : > { %3455 = vmatmul.mubr.msk.f32.vlgmr.msra.gmra.mxu1 %vm1312_vm3, %v1311_v60  ;;  %3457 = vmatprep.subr.mxu1 %v1409_v61  ;;  %v1755_v60 = vld [vmem:[#allocation11 + $0x128] sm:$0xff] }
 0x262   : > { %3497 = vmatmul.mubr.msk.f32.vlgmr.msra.gmra.mxu0 %vm1312_vm3, %v1489_v62  ;;  %3499 = vmatprep.subr.mxu0 %v1587_v63  ;;  %v1754_v62 = vld [vmem:[#allocation11 + $0x120] sm:$0xff] }
 0x263   : > { %3458 = vmatpush3.msra.mxu1 %v1409_v61  ;;  %3500 = vmatpush3.msra.mxu0 %v1587_v63  ;;  %v1933_v61 = vld [vmem:[#allocation11 + $0x1a8] sm:$0xff]  ;;  %v1932_v63 = vld [vmem:[#allocation11 + $0x1a0] sm:$0xff] }
 0x264   : > { %3459 = vmatprep.subr.mxu1 %v1408_v1  ;;  %3501 = vmatprep.subr.mxu0 %v1586_v2 }
 0x265   : > { %3460 = vmatpush3.msra.mxu1 %v1408_v1  ;;  %3502 = vmatpush3.msra.mxu0 %v1586_v2  ;;  %v1753_v1 = vld [vmem:[#allocation11 + $0x118] sm:$0xff] }
 0x266   : > { %3461 = vmatprep.subr.mxu1 %v1407_v3  ;;  %3503 = vmatprep.subr.mxu0 %v1585_v4  ;;  %v1931_v2 = vld [vmem:[#allocation11 + $0x198] sm:$0xff] }
 0x267   : > { %3462 = vmatpush3.msra.mxu1 %v1407_v3  ;;  %3504 = vmatpush3.msra.mxu0 %v1585_v4  ;;  %v1752_v3 = vld [vmem:[#allocation11 + $0x110] sm:$0xff] }
 0x268   : > { %3463 = vmatprep.subr.mxu1 %v1406_v5  ;;  %3505 = vmatprep.subr.mxu0 %v1584_v0  ;;  %v1930_v4 = vld [vmem:[#allocation11 + $0x190] sm:$0xff] }
 0x269   : > { %3464 = vmatpush3.msra.mxu1 %v1406_v5  ;;  %3506 = vmatpush3.msra.mxu0 %v1584_v0  ;;  %v1751_v5 = vld [vmem:[#allocation11 + $0x108] sm:$0xff] }
 0x26a   : > { %3465 = vmatprep.subr.mxu1 %v1405_v6  ;;  %3507 = vmatprep.subr.mxu0 %v1583_v7  ;;  %v1929_v0 = vld [vmem:[#allocation11 + $0x188] sm:$0xff] }
 0x26b   : > { %3466 = vmatpush3.msra.mxu1 %v1405_v6  ;;  %3508 = vmatpush3.msra.mxu0 %v1583_v7  ;;  %v1750_v6 = vld [vmem:[#allocation11 + $0x100] sm:$0xff] }
 0x26c   : > { %3467 = vmatprep.subr.mxu1 %v1404_v8  ;;  %3509 = vmatprep.subr.mxu0 %v1582_v9  ;;  %v1928_v7 = vld [vmem:[#allocation11 + $0x180] sm:$0xff] }
 0x26d   : > { %3468 = vmatpush3.msra.mxu1 %v1404_v8  ;;  %3510 = vmatpush3.msra.mxu0 %v1582_v9  ;;  %v3156_v8 = vld [vmem:[%s4635_s6] ss:$0 sm:$0xff] }
 0x26e   : > { %3469 = vmatprep.subr.mxu1 %v1403_v10  ;;  %3511 = vmatprep.subr.mxu0 %v1581_v11 }
 0x26f   : > { %3470 = vmatpush3.msra.mxu1 %v1403_v10  ;;  %3512 = vmatpush3.msra.mxu0 %v1581_v11 }
 0x270   : > { %3471 = vmatprep.subr.mxu1 %v1402_v12  ;;  %3513 = vmatprep.subr.mxu0 %v1580_v13 }
 0x271   : > { %3472 = vmatpush3.msra.mxu1 %v1402_v12  ;;  %3514 = vmatpush3.msra.mxu0 %v1580_v13 }
 0x272   : > { %3473 = vmatprep.subr.mxu1 %v1401_v14  ;;  %3515 = vmatprep.subr.mxu0 %v1579_v15 }
 0x273   : > { %3474 = vmatpush3.msra.mxu1 %v1401_v14  ;;  %3516 = vmatpush3.msra.mxu0 %v1579_v15 }
 0x274   : > { %3475 = vmatprep.subr.mxu1 %v1400_v16  ;;  %3517 = vmatprep.subr.mxu0 %v1578_v17 }
 0x275   : > { %3476 = vmatpush3.msra.mxu1 %v1400_v16  ;;  %3518 = vmatpush3.msra.mxu0 %v1578_v17 }
 0x276   : > { %3477 = vmatprep.subr.mxu1 %v1399_v18  ;;  %3519 = vmatprep.subr.mxu0 %v1577_v19 }
 0x277   : > { %3478 = vmatpush3.msra.mxu1 %v1399_v18  ;;  %3520 = vmatpush3.msra.mxu0 %v1577_v19 }
 0x278   : > { %3479 = vmatprep.subr.mxu1 %v1398_v20  ;;  %3521 = vmatprep.subr.mxu0 %v1576_v21 }
 0x279   : > { %3480 = vmatpush3.msra.mxu1 %v1398_v20  ;;  %3522 = vmatpush3.msra.mxu0 %v1576_v21  ;;  %v2022_v21 = vld [vmem:[#allocation10 + $0x40] sm:$0xff] }
 0x27a   : > { %3481 = vmatprep.subr.mxu1 %v1397_v22  ;;  %3523 = vmatprep.subr.mxu0 %v1575_v23 }
 0x27b   : > { %3482 = vmatpush3.msra.mxu1 %v1397_v22  ;;  %3524 = vmatpush3.msra.mxu0 %v1575_v23  ;;  %v2121_v22 = vld [vmem:[#allocation11 + $0x278] sm:$0xff]  ;;  %v2200_v23 = vld [vmem:[#allocation10 + $0x50] sm:$0xff] }
 0x27c   : > { %3483 = vmatprep.subr.mxu1 %v1396_v25  ;;  %3525 = vmatprep.subr.mxu0 %v1574_v26 }
 0x27d   : > { %3484 = vmatpush3.msra.mxu1 %v1396_v25  ;;  %3526 = vmatpush3.msra.mxu0 %v1574_v26  ;;  %v2299_v25 = vld [vmem:[#allocation11 + $0x2f8] sm:$0xff] }
 0x27e   : > { %3485 = vmatprep.subr.mxu1 %v1395_v27  ;;  %3527 = vmatprep.subr.mxu0 %v1573_v28  ;;  %v2023_v26 = vld [vmem:[#allocation10 + $0x48] sm:$0xff] }
 0x27f   : > { %3486 = vmatpush3.msra.mxu1 %v1395_v27  ;;  %3528 = vmatpush3.msra.mxu0 %v1573_v28  ;;  %v2201_v27 = vld [vmem:[#allocation10 + $0x58] sm:$0xff]  ;;  %v2120_v28 = vld [vmem:[#allocation11 + $0x270] sm:$0xff] }
 0x280   : > { %3487 = vmatprep.subr.mxu1 %v1394_v24  ;;  %3529 = vmatprep.subr.mxu0 %v1572_v30 }
 0x281   : > { %3488 = vmatpush3.msra.mxu1 %v1394_v24  ;;  %3530 = vmatpush3.msra.mxu0 %v1572_v30  ;;  %v2298_v24 = vld [vmem:[#allocation11 + $0x2f0] sm:$0xff]  ;;  %v2119_v30 = vld [vmem:[#allocation11 + $0x268] sm:$0xff] }
 0x282   : > { %3534 = vmatprep.subr.mxu1 %v4502_v57  ;;  %3576 = vmatprep.subr.mxu0 %v4502_v57 }
 0x321   : > { %v3456_v31 = vpop.f32.mrf.mxu1 }
 0x322   : > { %v3498_v33 = vpop.f32.mrf.mxu0 }
 0x323   : > { %v1385_v34 = vpop.f32.mrf.mxu1 }
 0x324   : > { %v1562_v35 = vpop.f32.mrf.mxu0  ;;  %3489 = vmatprep.mubr.f32.mxu1 %v1385_v34  ;;  %v2296_v34 = vld [vmem:[#allocation11 + $0x2e0] sm:$0xff] }
 0x325   : > { %3531 = vmatprep.mubr.f32.mxu0 %v1562_v35  ;;  %3490 = vmatmul.mubr.f32.vlgmr.msra.gmra.mxu1 %v3456_v31  ;;  %v2297_v31 = vld [vmem:[#allocation11 + $0x2e8] sm:$0xff]  ;;  %v2117_v35 = vld [vmem:[#allocation11 + $0x258] sm:$0xff] }
 0x326   : > { %3532 = vmatmul.mubr.f32.vlgmr.msra.gmra.mxu0 %v3498_v33  ;;  %3535 = vmatpush3.msra.mxu1 %v4502_v57  ;;  %v2118_v33 = vld [vmem:[#allocation11 + $0x260] sm:$0xff] }
 0x327   : > { %3577 = vmatpush3.msra.mxu0 %v4502_v57  ;;  %3536 = vmatprep.subr.mxu1 %v4504_v59 }
 0x328   : > { %3578 = vmatprep.subr.mxu0 %v4504_v59  ;;  %3537 = vmatpush3.msra.mxu1 %v4504_v59 }
 0x329   : > { %3579 = vmatpush3.msra.mxu0 %v4504_v59  ;;  %3538 = vmatprep.mubr.msk.f32.mxu1 %vm1312_vm3, %v1666_v29  ;;  %v2295_v29 = vld [vmem:[#allocation11 + $0x2d8] sm:$0xff] }
 0x32a   : > { %3541 = vmatprep.subr.mxu1 %v1765_v32  ;;  %3580 = vmatprep.mubr.msk.f32.mxu0 %vm1312_vm3, %v1844_v36  ;;  %v2294_v36 = vld [vmem:[#allocation11 + $0x2d0] sm:$0xff] }
 0x32b   : > { %3583 = vmatprep.subr.mxu0 %v1943_v37  ;;  %3539 = vmatmul.mubr.msk.f32.vlgmr.msra.gmra.mxu1 %vm1312_vm3, %v1667_v39  ;;  %v2293_v39 = vld [vmem:[#allocation11 + $0x2c8] sm:$0xff] }
 0x32c   : > { %3542 = vmatpush3.msra.mxu1 %v1765_v32  ;;  %3581 = vmatmul.mubr.msk.f32.vlgmr.msra.gmra.mxu0 %vm1312_vm3, %v1845_v40  ;;  %v2116_v32 = vld [vmem:[#allocation11 + $0x250] sm:$0xff]  ;;  %v2114_v40 = vld [vmem:[#allocation11 + $0x240] sm:$0xff] }
 0x32d   : > { %3584 = vmatpush3.msra.mxu0 %v1943_v37  ;;  %3543 = vmatprep.subr.mxu1 %v1764_v41  ;;  %v2115_v37 = vld [vmem:[#allocation11 + $0x248] sm:$0xff] }
 0x32e   : > { %3585 = vmatprep.subr.mxu0 %v1942_v42  ;;  %3544 = vmatpush3.msra.mxu1 %v1764_v41  ;;  %v2292_v41 = vld [vmem:[#allocation11 + $0x2c0] sm:$0xff] }
 0x32f   : > { %3586 = vmatpush3.msra.mxu0 %v1942_v42  ;;  %3545 = vmatprep.subr.mxu1 %v1763_v44  ;;  %v2113_v42 = vld [vmem:[#allocation11 + $0x238] sm:$0xff] }
 0x330   : > { %3587 = vmatprep.subr.mxu0 %v1941_v38  ;;  %3546 = vmatpush3.msra.mxu1 %v1763_v44  ;;  %v2291_v44 = vld [vmem:[#allocation11 + $0x2b8] sm:$0xff] }
 0x331   : > { %3588 = vmatpush3.msra.mxu0 %v1941_v38  ;;  %3547 = vmatprep.subr.mxu1 %v1762_v43  ;;  %v2112_v38 = vld [vmem:[#allocation11 + $0x230] sm:$0xff] }
 0x332   : > { %3589 = vmatprep.subr.mxu0 %v1940_v45  ;;  %3548 = vmatpush3.msra.mxu1 %v1762_v43  ;;  %v2290_v43 = vld [vmem:[#allocation11 + $0x2b0] sm:$0xff] }
 0x333   : > { %3590 = vmatpush3.msra.mxu0 %v1940_v45  ;;  %3549 = vmatprep.subr.mxu1 %v1761_v46  ;;  %v2111_v45 = vld [vmem:[#allocation11 + $0x228] sm:$0xff] }
 0x334   : > { %3591 = vmatprep.subr.mxu0 %v1939_v47  ;;  %3550 = vmatpush3.msra.mxu1 %v1761_v46  ;;  %v2289_v46 = vld [vmem:[#allocation11 + $0x2a8] sm:$0xff] }
 0x335   : > { %3592 = vmatpush3.msra.mxu0 %v1939_v47  ;;  %3551 = vmatprep.subr.mxu1 %v1760_v48  ;;  %v2110_v47 = vld [vmem:[#allocation11 + $0x220] sm:$0xff] }
 0x336   : > { %3593 = vmatprep.subr.mxu0 %v1938_v49  ;;  %3552 = vmatpush3.msra.mxu1 %v1760_v48  ;;  %v2288_v48 = vld [vmem:[#allocation11 + $0x2a0] sm:$0xff] }
 0x337   : > { %3594 = vmatpush3.msra.mxu0 %v1938_v49  ;;  %3553 = vmatprep.subr.mxu1 %v1759_v50  ;;  %v2109_v49 = vld [vmem:[#allocation11 + $0x218] sm:$0xff] }
 0x338   : > { %3595 = vmatprep.subr.mxu0 %v1937_v51  ;;  %3554 = vmatpush3.msra.mxu1 %v1759_v50  ;;  %v2287_v50 = vld [vmem:[#allocation11 + $0x298] sm:$0xff] }
 0x339   : > { %3596 = vmatpush3.msra.mxu0 %v1937_v51  ;;  %3555 = vmatprep.subr.mxu1 %v1758_v52  ;;  %v2108_v51 = vld [vmem:[#allocation11 + $0x210] sm:$0xff] }
 0x33a   : > { %3597 = vmatprep.subr.mxu0 %v1936_v53  ;;  %3556 = vmatpush3.msra.mxu1 %v1758_v52  ;;  %v2286_v52 = vld [vmem:[#allocation11 + $0x290] sm:$0xff] }
 0x33b   : > { %3598 = vmatpush3.msra.mxu0 %v1936_v53  ;;  %3557 = vmatprep.subr.mxu1 %v1757_v54  ;;  %v2107_v53 = vld [vmem:[#allocation11 + $0x208] sm:$0xff] }
 0x33c   : > { %3599 = vmatprep.subr.mxu0 %v1935_v56  ;;  %3558 = vmatpush3.msra.mxu1 %v1757_v54  ;;  %v2285_v54 = vld [vmem:[#allocation11 + $0x288] sm:$0xff] }
 0x33d   : > { %3600 = vmatpush3.msra.mxu0 %v1935_v56  ;;  %3559 = vmatprep.subr.mxu1 %v1756_v55  ;;  %v2106_v56 = vld [vmem:[#allocation11 + $0x200] sm:$0xff] }
 0x33e   : > { %3601 = vmatprep.subr.mxu0 %v1934_v58  ;;  %3560 = vmatpush3.msra.mxu1 %v1756_v55  ;;  %v2284_v55 = vld [vmem:[#allocation11 + $0x280] sm:$0xff] }
 0x33f   : > { %3602 = vmatpush3.msra.mxu0 %v1934_v58  ;;  %3561 = vmatprep.subr.mxu1 %v1755_v60 }
 0x340   : > { %3603 = vmatprep.subr.mxu0 %v1933_v61  ;;  %3562 = vmatpush3.msra.mxu1 %v1755_v60 }
 0x341   : > { %3604 = vmatpush3.msra.mxu0 %v1933_v61  ;;  %3563 = vmatprep.subr.mxu1 %v1754_v62 }
 0x342   : > { %3605 = vmatprep.subr.mxu0 %v1932_v63  ;;  %3564 = vmatpush3.msra.mxu1 %v1754_v62 }
 0x343   : > { %3606 = vmatpush3.msra.mxu0 %v1932_v63  ;;  %3565 = vmatprep.subr.mxu1 %v1753_v1 }
 0x344   : > { %3607 = vmatprep.subr.mxu0 %v1931_v2  ;;  %3566 = vmatpush3.msra.mxu1 %v1753_v1 }
 0x345   : > { %3608 = vmatpush3.msra.mxu0 %v1931_v2  ;;  %3567 = vmatprep.subr.mxu1 %v1752_v3 }
 0x346   : > { %3609 = vmatprep.subr.mxu0 %v1930_v4  ;;  %3568 = vmatpush3.msra.mxu1 %v1752_v3 }
 0x347   : > { %3610 = vmatpush3.msra.mxu0 %v1930_v4  ;;  %3569 = vmatprep.subr.mxu1 %v1751_v5 }
 0x348   : > { %3611 = vmatprep.subr.mxu0 %v1929_v0  ;;  %3570 = vmatpush3.msra.mxu1 %v1751_v5 }
 0x349   : > { %3612 = vmatpush3.msra.mxu0 %v1929_v0  ;;  %3571 = vmatprep.subr.mxu1 %v1750_v6 }
 0x34a   : > { %3613 = vmatprep.subr.mxu0 %v1928_v7  ;;  %3572 = vmatpush3.msra.mxu1 %v1750_v6 }
 0x34b   : > { %3614 = vmatpush3.msra.mxu0 %v1928_v7  ;;  %3618 = vmatprep.subr.mxu1 %v4502_v57  ;;  %v2378_v7 = vld [vmem:[#allocation10 + $0x60] sm:$0xff] }
 0x34c   : > { %3660 = vmatprep.subr.mxu0 %v4502_v57 }
 0x3e5   : > { %v3491_v9 = vpop.f32.mrf.mxu1 }
 0x3e6   : > { %v1486_v10 = vadd.f32 %v3491_v9, %v3156_v8  ;;  %v3533_v11 = vpop.f32.mrf.mxu0  ;;  %v2379_v9 = vld [vmem:[#allocation10 + $0x68] sm:$0xff] }
 0x3e7   : > { %v1476_v12 = vpop.f32.mrf.mxu1 }
 0x3e8   : > { %v4533_v13 = vadd.f32 %v3533_v11, %v1486_v10  ;;  %v1485_v14 = vadd.f32 %v3156_v8, %v1476_v12  ;;  %v1654_v15 = vpop.f32.mrf.mxu0  ;;  %v2477_v8 = vld [vmem:[#allocation11 + $0x378] sm:$0xff]  ;;  %v2556_v10 = vld [vmem:[#allocation10 + $0x70] sm:$0xff]  ;;  %v2476_v11 = vld [vmem:[#allocation11 + $0x370] sm:$0xff] }
 0x3e9   : > { %v2557_v12 = vld [vmem:[#allocation10 + $0x78] sm:$0xff] }
 0x3ea   : > { %v4535_v16 = vadd.f32 %v1654_v15, %v1485_v14  ;;  %v2475_v14 = vld [vmem:[#allocation11 + $0x368] sm:$0xff]  ;;  %v2654_v15 = vld [vmem:[#allocation11 + $0x3f0] sm:$0xff] }
 0x3eb   : > { %v3540_v17 = vpop.f32.mrf.mxu1 }
 0x3ec   : > { %v3582_v18 = vpop.f32.mrf.mxu0 }
 0x3ed   : > { %v1740_v19 = vpop.f32.mrf.mxu1 }
 0x3ee   : > { %v1918_v20 = vpop.f32.mrf.mxu0  ;;  %3573 = vmatprep.mubr.f32.mxu1 %v1740_v19  ;;  %v2652_v19 = vld [vmem:[#allocation11 + $0x3e0] sm:$0xff] }
 0x3ef   : > { %3615 = vmatprep.mubr.f32.mxu0 %v1918_v20  ;;  %3574 = vmatmul.mubr.f32.vlgmr.msra.gmra.mxu1 %v3540_v17  ;;  %v2653_v17 = vld [vmem:[#allocation11 + $0x3e8] sm:$0xff]  ;;  %v2472_v20 = vld [vmem:[#allocation11 + $0x350] sm:$0xff] }
 0x3f0   : > { %3616 = vmatmul.mubr.f32.vlgmr.msra.gmra.mxu0 %v3582_v18  ;;  %3619 = vmatpush3.msra.mxu1 %v4502_v57  ;;  %v2473_v18 = vld [vmem:[#allocation11 + $0x358] sm:$0xff] }
 0x3f1   : > { %3661 = vmatpush3.msra.mxu0 %v4502_v57  ;;  %3620 = vmatprep.subr.mxu1 %v4504_v59 }
 0x3f2   : > { %3662 = vmatprep.subr.mxu0 %v4504_v59  ;;  %3621 = vmatpush3.msra.mxu1 %v4504_v59 }
 0x3f3   : > { %3663 = vmatpush3.msra.mxu0 %v4504_v59  ;;  %3622 = vmatprep.mubr.msk.f32.mxu1 %vm1312_vm3, %v2022_v21  ;;  %v2651_v21 = vld [vmem:[#allocation11 + $0x3d8] sm:$0xff] }
 0x3f4   : > { %3625 = vmatprep.subr.mxu1 %v2121_v22  ;;  %3664 = vmatprep.mubr.msk.f32.mxu0 %vm1312_vm3, %v2200_v23  ;;  %v2650_v23 = vld [vmem:[#allocation11 + $0x3d0] sm:$0xff] }
 0x3f5   : > { %3667 = vmatprep.subr.mxu0 %v2299_v25  ;;  %3623 = vmatmul.mubr.msk.f32.vlgmr.msra.gmra.mxu1 %vm1312_vm3, %v2023_v26  ;;  %v2649_v26 = vld [vmem:[#allocation11 + $0x3c8] sm:$0xff] }
 0x3f6   : > { %3626 = vmatpush3.msra.mxu1 %v2121_v22  ;;  %3665 = vmatmul.mubr.msk.f32.vlgmr.msra.gmra.mxu0 %vm1312_vm3, %v2201_v27  ;;  %v2471_v22 = vld [vmem:[#allocation11 + $0x348] sm:$0xff]  ;;  %v2469_v27 = vld [vmem:[#allocation11 + $0x338] sm:$0xff] }
 0x3f7   : > { %3668 = vmatpush3.msra.mxu0 %v2299_v25  ;;  %3627 = vmatprep.subr.mxu1 %v2120_v28  ;;  %v2470_v25 = vld [vmem:[#allocation11 + $0x340] sm:$0xff] }
 0x3f8   : > { %3669 = vmatprep.subr.mxu0 %v2298_v24  ;;  %3628 = vmatpush3.msra.mxu1 %v2120_v28  ;;  %v2648_v28 = vld [vmem:[#allocation11 + $0x3c0] sm:$0xff] }
 0x3f9   : > { %3670 = vmatpush3.msra.mxu0 %v2298_v24  ;;  %3629 = vmatprep.subr.mxu1 %v2119_v30  ;;  %v2468_v24 = vld [vmem:[#allocation11 + $0x330] sm:$0xff] }
 0x3fa   : > { %3671 = vmatprep.subr.mxu0 %v2297_v31  ;;  %3630 = vmatpush3.msra.mxu1 %v2119_v30  ;;  %v2647_v30 = vld [vmem:[#allocation11 + $0x3b8] sm:$0xff] }
 0x3fb   : > { %3672 = vmatpush3.msra.mxu0 %v2297_v31  ;;  %3631 = vmatprep.subr.mxu1 %v2118_v33  ;;  %v2467_v31 = vld [vmem:[#allocation11 + $0x328] sm:$0xff] }
 0x3fc   : > { %3673 = vmatprep.subr.mxu0 %v2296_v34  ;;  %3632 = vmatpush3.msra.mxu1 %v2118_v33  ;;  %v2646_v33 = vld [vmem:[#allocation11 + $0x3b0] sm:$0xff] }
 0x3fd   : > { %3674 = vmatpush3.msra.mxu0 %v2296_v34  ;;  %3633 = vmatprep.subr.mxu1 %v2117_v35  ;;  %v2466_v34 = vld [vmem:[#allocation11 + $0x320] sm:$0xff] }
 0x3fe   : > { %3675 = vmatprep.subr.mxu0 %v2295_v29  ;;  %3634 = vmatpush3.msra.mxu1 %v2117_v35  ;;  %v2645_v35 = vld [vmem:[#allocation11 + $0x3a8] sm:$0xff] }
 0x3ff   : > { %3676 = vmatpush3.msra.mxu0 %v2295_v29  ;;  %3635 = vmatprep.subr.mxu1 %v2116_v32  ;;  %v2465_v29 = vld [vmem:[#allocation11 + $0x318] sm:$0xff] }
 0x400   : > { %3677 = vmatprep.subr.mxu0 %v2294_v36  ;;  %3636 = vmatpush3.msra.mxu1 %v2116_v32  ;;  %v2464_v32 = vld [vmem:[#allocation11 + $0x310] sm:$0xff] }
 0x401   : > { %3678 = vmatpush3.msra.mxu0 %v2294_v36  ;;  %3637 = vmatprep.subr.mxu1 %v2115_v37  ;;  %v2463_v36 = vld [vmem:[#allocation11 + $0x308] sm:$0xff] }
 0x402   : > { %3679 = vmatprep.subr.mxu0 %v2293_v39  ;;  %3638 = vmatpush3.msra.mxu1 %v2115_v37  ;;  %v2462_v37 = vld [vmem:[#allocation11 + $0x300] sm:$0xff] }
 0x403   : > { %3680 = vmatpush3.msra.mxu0 %v2293_v39  ;;  %3639 = vmatprep.subr.mxu1 %v2114_v40  ;;  %v2644_v39 = vld [vmem:[#allocation11 + $0x3a0] sm:$0xff] }
 0x404   : > { %3681 = vmatprep.subr.mxu0 %v2292_v41  ;;  %3640 = vmatpush3.msra.mxu1 %v2114_v40  ;;  %v2643_v40 = vld [vmem:[#allocation11 + $0x398] sm:$0xff] }
 0x405   : > { %3682 = vmatpush3.msra.mxu0 %v2292_v41  ;;  %3641 = vmatprep.subr.mxu1 %v2113_v42  ;;  %v2642_v41 = vld [vmem:[#allocation11 + $0x390] sm:$0xff] }
 0x406   : > { %3683 = vmatprep.subr.mxu0 %v2291_v44  ;;  %3642 = vmatpush3.msra.mxu1 %v2113_v42  ;;  %v2641_v42 = vld [vmem:[#allocation11 + $0x388] sm:$0xff] }
 0x407   : > { %3684 = vmatpush3.msra.mxu0 %v2291_v44  ;;  %3643 = vmatprep.subr.mxu1 %v2112_v38  ;;  %v2640_v44 = vld [vmem:[#allocation11 + $0x380] sm:$0xff] }
 0x408   : > { %3685 = vmatprep.subr.mxu0 %v2290_v43  ;;  %3644 = vmatpush3.msra.mxu1 %v2112_v38  ;;  %v3975_v38 = vld [vmem:[#allocation8 + $0x78] sm:$0xff] }
 0x409   : > { %3686 = vmatpush3.msra.mxu0 %v2290_v43  ;;  %3645 = vmatprep.subr.mxu1 %v2111_v45 }
 0x40a   : > { %3687 = vmatprep.subr.mxu0 %v2289_v46  ;;  %3646 = vmatpush3.msra.mxu1 %v2111_v45 }
 0x40b   : > { %3688 = vmatpush3.msra.mxu0 %v2289_v46  ;;  %3647 = vmatprep.subr.mxu1 %v2110_v47 }
 0x40c   : > { %3689 = vmatprep.subr.mxu0 %v2288_v48  ;;  %3648 = vmatpush3.msra.mxu1 %v2110_v47 }
 0x40d   : > { %3690 = vmatpush3.msra.mxu0 %v2288_v48  ;;  %3649 = vmatprep.subr.mxu1 %v2109_v49 }
 0x40e   : > { %3691 = vmatprep.subr.mxu0 %v2287_v50  ;;  %3650 = vmatpush3.msra.mxu1 %v2109_v49 }
 0x40f   : > { %3692 = vmatpush3.msra.mxu0 %v2287_v50  ;;  %3651 = vmatprep.subr.mxu1 %v2108_v51 }
 0x410   : > { %3693 = vmatprep.subr.mxu0 %v2286_v52  ;;  %3652 = vmatpush3.msra.mxu1 %v2108_v51 }
 0x411   : > { %3694 = vmatpush3.msra.mxu0 %v2286_v52  ;;  %3653 = vmatprep.subr.mxu1 %v2107_v53 }
 0x412   : > { %3695 = vmatprep.subr.mxu0 %v2285_v54  ;;  %3654 = vmatpush3.msra.mxu1 %v2107_v53 }
 0x413   : > { %3696 = vmatpush3.msra.mxu0 %v2285_v54  ;;  %3655 = vmatprep.subr.mxu1 %v2106_v56 }
 0x414   : > { %3697 = vmatprep.subr.mxu0 %v2284_v55  ;;  %3656 = vmatpush3.msra.mxu1 %v2106_v56 }
 0x415   : > { %3698 = vmatpush3.msra.mxu0 %v2284_v55  ;;  %3702 = vmatprep.subr.mxu1 %v4502_v57  ;;  %v2734_v55 = vld [vmem:[#allocation10 + $0x80] sm:$0xff] }
 0x416   : > { %3744 = vmatprep.subr.mxu0 %v4502_v57 }
 0x4af   : > { %v3575_v58 = vpop.f32.mrf.mxu1 }
 0x4b0   : > { %v1842_v60 = vadd.f32 %v3575_v58, %v4533_v13  ;;  %v3617_v61 = vpop.f32.mrf.mxu0  ;;  %v2655_v13 = vld [vmem:[#allocation11 + $0x3f8] sm:$0xff] }
 0x4b1   : > { %v1832_v62 = vpop.f32.mrf.mxu1  ;;  %v2735_v58 = vld [vmem:[#allocation10 + $0x88] sm:$0xff] }
 0x4b2   : > { %v4550_v63 = vadd.f32 %v3617_v61, %v1842_v60  ;;  %v1841_v1 = vadd.f32 %v1832_v62, %v4535_v16  ;;  %v2010_v2 = vpop.f32.mrf.mxu0  ;;  %v2474_v16 = vld [vmem:[#allocation11 + $0x360] sm:$0xff]  ;;  %v2833_v60 = vld [vmem:[#allocation11 + $0x478] sm:$0xff]  ;;  %v2832_v61 = vld [vmem:[#allocation11 + $0x470] sm:$0xff] }
 0x4b3   : > { %v2831_v62 = vld [vmem:[#allocation11 + $0x468] sm:$0xff] }
 0x4b4   : > { %v4553_v3 = vadd.f32 %v2010_v2, %v1841_v1  ;;  %v3977_v1 = vld [vmem:[#allocation8 + $0x68] sm:$0xff]  ;;  %v3978_v2 = vld [vmem:[#allocation8 + $0x60] sm:$0xff] }
 0x4b5   : > { %v3624_v4 = vpop.f32.mrf.mxu1 }
 0x4b6   : > { %v3666_v5 = vpop.f32.mrf.mxu0 }
 0x4b7   : > { %v2096_v0 = vpop.f32.mrf.mxu1 }
 0x4b8   : > { %v2274_v6 = vpop.f32.mrf.mxu0  ;;  %3657 = vmatprep.mubr.f32.mxu1 %v2096_v0  ;;  %v3980_v0 = vld [vmem:[#allocation8 + $0x50] sm:$0xff] }
 0x4b9   : > { %3699 = vmatprep.mubr.f32.mxu0 %v2274_v6  ;;  %3658 = vmatmul.mubr.f32.vlgmr.msra.gmra.mxu1 %v3624_v4  ;;  %v3979_v4 = vld [vmem:[#allocation8 + $0x58] sm:$0xff]  ;;  %v2826_v6 = vld [vmem:[#allocation11 + $0x440] sm:$0xff] }
 0x4ba   : > { %3700 = vmatmul.mubr.f32.vlgmr.msra.gmra.mxu0 %v3666_v5  ;;  %3703 = vmatpush3.msra.mxu1 %v4502_v57  ;;  %v2827_v5 = vld [vmem:[#allocation11 + $0x448] sm:$0xff] }
 0x4bb   : > { %3745 = vmatpush3.msra.mxu0 %v4502_v57  ;;  %3704 = vmatprep.subr.mxu1 %v4504_v59 }
 0x4bc   : > { %3746 = vmatprep.subr.mxu0 %v4504_v59  ;;  %3705 = vmatpush3.msra.mxu1 %v4504_v59 }
 0x4bd   : > { %3747 = vmatpush3.msra.mxu0 %v4504_v59  ;;  %3706 = vmatprep.mubr.msk.f32.mxu1 %vm1312_vm3, %v2378_v7  ;;  %v3981_v7 = vld [vmem:[#allocation8 + $0x48] sm:$0xff] }
 0x4be   : > { %3709 = vmatprep.subr.mxu1 %v2477_v8  ;;  %3707 = vmatmul.mubr.msk.f32.vlgmr.msra.gmra.mxu1 %vm1312_vm3, %v2379_v9  ;;  %v3982_v9 = vld [vmem:[#allocation8 + $0x40] sm:$0xff] }
 0x4bf   : > { %3710 = vmatpush3.msra.mxu1 %v2477_v8  ;;  %3748 = vmatprep.mubr.msk.f32.mxu0 %vm1312_vm3, %v2556_v10  ;;  %v2825_v8 = vld [vmem:[#allocation11 + $0x438] sm:$0xff]  ;;  %v2824_v10 = vld [vmem:[#allocation11 + $0x430] sm:$0xff] }
 0x4c0   : > { %3711 = vmatprep.subr.mxu1 %v2476_v11  ;;  %3749 = vmatmul.mubr.msk.f32.vlgmr.msra.gmra.mxu0 %vm1312_vm3, %v2557_v12  ;;  %v2823_v12 = vld [vmem:[#allocation11 + $0x428] sm:$0xff] }
 0x4c1   : > { %3712 = vmatpush3.msra.mxu1 %v2476_v11  ;;  %3751 = vmatprep.subr.mxu0 %v2655_v13  ;;  %v3983_v11 = vld [vmem:[#allocation8 + $0x38] sm:$0xff] }
 0x4c2   : > { %3713 = vmatprep.subr.mxu1 %v2475_v14  ;;  %3752 = vmatpush3.msra.mxu0 %v2655_v13  ;;  %v3984_v13 = vld [vmem:[#allocation8 + $0x30] sm:$0xff] }
 0x4c3   : > { %3714 = vmatpush3.msra.mxu1 %v2475_v14  ;;  %3753 = vmatprep.subr.mxu0 %v2654_v15  ;;  %v2822_v14 = vld [vmem:[#allocation11 + $0x420] sm:$0xff] }
 0x4c4   : > { %3715 = vmatprep.subr.mxu1 %v2474_v16  ;;  %3754 = vmatpush3.msra.mxu0 %v2654_v15  ;;  %v3985_v15 = vld [vmem:[#allocation8 + $0x28] sm:$0xff] }
 0x4c5   : > { %3716 = vmatpush3.msra.mxu1 %v2474_v16  ;;  %3755 = vmatprep.subr.mxu0 %v2653_v17  ;;  %v3986_v16 = vld [vmem:[#allocation8 + $0x20] sm:$0xff] }
 0x4c6   : > { %3717 = vmatprep.subr.mxu1 %v2473_v18  ;;  %3756 = vmatpush3.msra.mxu0 %v2653_v17  ;;  %v3987_v17 = vld [vmem:[#allocation8 + $0x18] sm:$0xff] }
 0x4c7   : > { %3718 = vmatpush3.msra.mxu1 %v2473_v18  ;;  %3757 = vmatprep.subr.mxu0 %v2652_v19  ;;  %v3988_v18 = vld [vmem:[#allocation8 + $0x10] sm:$0xff] }
 0x4c8   : > { %3719 = vmatprep.subr.mxu1 %v2472_v20  ;;  %3758 = vmatpush3.msra.mxu0 %v2652_v19  ;;  %v3989_v19 = vld [vmem:[#allocation8 + $0x8] sm:$0xff] }
 0x4c9   : > { %3720 = vmatpush3.msra.mxu1 %v2472_v20  ;;  %3759 = vmatprep.subr.mxu0 %v2651_v21  ;;  %v3990_v20 = vld [vmem:[#allocation8] sm:$0xff] }
 0x4ca   : > { %3721 = vmatprep.subr.mxu1 %v2471_v22  ;;  %3760 = vmatpush3.msra.mxu0 %v2651_v21  ;;  %v2821_v21 = vld [vmem:[#allocation11 + $0x418] sm:$0xff] }
 0x4cb   : > { %3722 = vmatpush3.msra.mxu1 %v2471_v22  ;;  %3761 = vmatprep.subr.mxu0 %v2650_v23  ;;  %v2820_v22 = vld [vmem:[#allocation11 + $0x410] sm:$0xff] }
 0x4cc   : > { %3723 = vmatprep.subr.mxu1 %v2470_v25  ;;  %3762 = vmatpush3.msra.mxu0 %v2650_v23  ;;  %v2819_v23 = vld [vmem:[#allocation11 + $0x408] sm:$0xff] }
 0x4cd   : > { %3724 = vmatpush3.msra.mxu1 %v2470_v25  ;;  %3763 = vmatprep.subr.mxu0 %v2649_v26  ;;  %v2818_v25 = vld [vmem:[#allocation11 + $0x400] sm:$0xff] }
 0x4ce   : > { %3725 = vmatprep.subr.mxu1 %v2469_v27  ;;  %3764 = vmatpush3.msra.mxu0 %v2649_v26 }
 0x4cf   : > { %3726 = vmatpush3.msra.mxu1 %v2469_v27  ;;  %3765 = vmatprep.subr.mxu0 %v2648_v28 }
 0x4d0   : > { %3727 = vmatprep.subr.mxu1 %v2468_v24  ;;  %3766 = vmatpush3.msra.mxu0 %v2648_v28 }
 0x4d1   : > { %3728 = vmatpush3.msra.mxu1 %v2468_v24  ;;  %3767 = vmatprep.subr.mxu0 %v2647_v30 }
 0x4d2   : > { %3729 = vmatprep.subr.mxu1 %v2467_v31  ;;  %3768 = vmatpush3.msra.mxu0 %v2647_v30 }
 0x4d3   : > { %3730 = vmatpush3.msra.mxu1 %v2467_v31  ;;  %3769 = vmatprep.subr.mxu0 %v2646_v33 }
 0x4d4   : > { %3731 = vmatprep.subr.mxu1 %v2466_v34  ;;  %3770 = vmatpush3.msra.mxu0 %v2646_v33 }
 0x4d5   : > { %3732 = vmatpush3.msra.mxu1 %v2466_v34  ;;  %3771 = vmatprep.subr.mxu0 %v2645_v35 }
 0x4d6   : > { %3733 = vmatprep.subr.mxu1 %v2465_v29  ;;  %3772 = vmatpush3.msra.mxu0 %v2645_v35 }
 0x4d7   : > { %3734 = vmatpush3.msra.mxu1 %v2465_v29  ;;  %3773 = vmatprep.subr.mxu0 %v2644_v39 }
 0x4d8   : > { %3735 = vmatprep.subr.mxu1 %v2464_v32  ;;  %3774 = vmatpush3.msra.mxu0 %v2644_v39 }
 0x4d9   : > { %3736 = vmatpush3.msra.mxu1 %v2464_v32  ;;  %3775 = vmatprep.subr.mxu0 %v2643_v40 }
 0x4da   : > { %3737 = vmatprep.subr.mxu1 %v2463_v36  ;;  %3776 = vmatpush3.msra.mxu0 %v2643_v40 }
 0x4db   : > { %3738 = vmatpush3.msra.mxu1 %v2463_v36  ;;  %3777 = vmatprep.subr.mxu0 %v2642_v41 }
 0x4dc   : > { %3739 = vmatprep.subr.mxu1 %v2462_v37  ;;  %3778 = vmatpush3.msra.mxu0 %v2642_v41 }
 0x4dd   : > { %3740 = vmatpush3.msra.mxu1 %v2462_v37  ;;  %3779 = vmatprep.subr.mxu0 %v2641_v42 }
 0x4de   : > { %3786 = vmatprep.subr.mxu1 %v4502_v57  ;;  %3780 = vmatpush3.msra.mxu0 %v2641_v42 }
 0x4df   : > { %3781 = vmatprep.subr.mxu0 %v2640_v44 }
 0x4e0   : > { %3782 = vmatpush3.msra.mxu0 %v2640_v44 }
 0x4e1   : > { %3828 = vmatprep.subr.mxu0 %v3975_v38 }
 0x579   : > { %v3659_v43 = vpop.f32.mrf.mxu1 }
 0x57a   : > { %v2198_v45 = vadd.f32 %v3659_v43, %v4550_v63  ;;  %v3701_v46 = vpop.f32.mrf.mxu0  ;;  %v3976_v63 = vld [vmem:[#allocation8 + $0x70] sm:$0xff] }
 0x57b   : > { %v2188_v47 = vpop.f32.mrf.mxu1 }
 0x57c   : > { %v2197_v48 = vadd.f32 %v2188_v47, %v4553_v3  ;;  %v4568_v49 = vadd.f32 %v3701_v46, %v2198_v45  ;;  %v2366_v50 = vpop.f32.mrf.mxu0  ;;  %v2828_v3 = vld [vmem:[#allocation11 + $0x450] sm:$0xff] }
 0x57e   : > { %v4570_v51 = vadd.f32 %v2366_v50, %v2197_v48  ;;  %v3708_v52 = vpop.f32.mrf.mxu1 }
 0x580   : > { %v2452_v53 = vpop.f32.mrf.mxu1  ;;  %v3750_v54 = vpop.f32.mrf.mxu0 }
 0x581   : > { %3741 = vmatprep.mubr.f32.mxu1 %v2452_v53 }
 0x582   : > { %3742 = vmatmul.mubr.f32.vlgmr.msra.gmra.mxu1 %v3708_v52  ;;  %v2630_v56 = vpop.f32.mrf.mxu0 }
 0x583   : > { %3787 = vmatpush3.msra.mxu1 %v4502_v57  ;;  %3783 = vmatprep.mubr.f32.mxu0 %v2630_v56  ;;  %v2830_v57 = vld [vmem:[#allocation11 + $0x460] sm:$0xff] }
 0x584   : > { %3788 = vmatprep.subr.mxu1 %v4504_v59  ;;  %3784 = vmatmul.mubr.f32.vlgmr.msra.gmra.mxu0 %v3750_v54 }
 0x585   : > { %3789 = vmatpush3.msra.mxu1 %v4504_v59  ;;  %3790 = vmatprep.mubr.msk.f32.mxu1 %vm1312_vm3, %v2734_v55  ;;  %v2829_v59 = vld [vmem:[#allocation11 + $0x458] sm:$0xff] }
 0x586   : > { %3791 = vmatmul.mubr.msk.f32.vlgmr.msra.gmra.mxu1 %vm1312_vm3, %v2735_v58  ;;  %3793 = vmatprep.subr.mxu1 %v2833_v60 }
 0x587   : > { %3794 = vmatpush3.msra.mxu1 %v2833_v60  ;;  %3829 = vmatpush3.msra.mxu0 %v3975_v38 }
 0x588   : > { %3795 = vmatprep.subr.mxu1 %v2832_v61  ;;  %3830 = vmatprep.subr.mxu0 %v3976_v63 }
 0x589   : > { %3796 = vmatpush3.msra.mxu1 %v2832_v61  ;;  %3831 = vmatpush3.msra.mxu0 %v3976_v63 }
 0x58a   : > { %3797 = vmatprep.subr.mxu1 %v2831_v62  ;;  %3832 = vmatprep.subr.mxu0 %v3977_v1 }
 0x58b   : > { %3798 = vmatpush3.msra.mxu1 %v2831_v62  ;;  %3833 = vmatpush3.msra.mxu0 %v3977_v1 }
 0x58c   : > { %3799 = vmatprep.subr.mxu1 %v2830_v57  ;;  %3834 = vmatprep.subr.mxu0 %v3978_v2 }
 0x58d   : > { %3800 = vmatpush3.msra.mxu1 %v2830_v57  ;;  %3835 = vmatpush3.msra.mxu0 %v3978_v2 }
 0x58e   : > { %3801 = vmatprep.subr.mxu1 %v2829_v59  ;;  %3836 = vmatprep.subr.mxu0 %v3979_v4 }
 0x58f   : > { %3802 = vmatpush3.msra.mxu1 %v2829_v59  ;;  %3837 = vmatpush3.msra.mxu0 %v3979_v4 }
 0x590   : > { %3803 = vmatprep.subr.mxu1 %v2828_v3  ;;  %3838 = vmatprep.subr.mxu0 %v3980_v0 }
 0x591   : > { %3804 = vmatpush3.msra.mxu1 %v2828_v3  ;;  %3839 = vmatpush3.msra.mxu0 %v3980_v0 }
 0x592   : > { %3805 = vmatprep.subr.mxu1 %v2827_v5  ;;  %3840 = vmatprep.subr.mxu0 %v3981_v7 }
 0x593   : > { %3806 = vmatpush3.msra.mxu1 %v2827_v5  ;;  %3841 = vmatpush3.msra.mxu0 %v3981_v7 }
 0x594   : > { %3807 = vmatprep.subr.mxu1 %v2826_v6  ;;  %3842 = vmatprep.subr.mxu0 %v3982_v9 }
 0x595   : > { %3808 = vmatpush3.msra.mxu1 %v2826_v6  ;;  %3843 = vmatpush3.msra.mxu0 %v3982_v9 }
 0x596   : > { %3809 = vmatprep.subr.mxu1 %v2825_v8  ;;  %3844 = vmatprep.subr.mxu0 %v3983_v11 }
 0x597   : > { %3810 = vmatpush3.msra.mxu1 %v2825_v8  ;;  %3845 = vmatpush3.msra.mxu0 %v3983_v11 }
 0x598   : > { %3811 = vmatprep.subr.mxu1 %v2824_v10  ;;  %3846 = vmatprep.subr.mxu0 %v3984_v13 }
 0x599   : > { %3812 = vmatpush3.msra.mxu1 %v2824_v10  ;;  %3847 = vmatpush3.msra.mxu0 %v3984_v13 }
 0x59a   : > { %3813 = vmatprep.subr.mxu1 %v2823_v12  ;;  %3848 = vmatprep.subr.mxu0 %v3985_v15 }
 0x59b   : > { %3814 = vmatpush3.msra.mxu1 %v2823_v12  ;;  %3849 = vmatpush3.msra.mxu0 %v3985_v15 }
 0x59c   : > { %3815 = vmatprep.subr.mxu1 %v2822_v14  ;;  %3850 = vmatprep.subr.mxu0 %v3986_v16 }
 0x59d   : > { %3816 = vmatpush3.msra.mxu1 %v2822_v14  ;;  %3851 = vmatpush3.msra.mxu0 %v3986_v16 }
 0x59e   : > { %3852 = vmatprep.subr.mxu0 %v3987_v17  ;;  %3817 = vmatprep.subr.mxu1 %v2821_v21 }
 0x59f   : > { %3853 = vmatpush3.msra.mxu0 %v3987_v17  ;;  %3818 = vmatpush3.msra.mxu1 %v2821_v21 }
 0x5a0   : > { %3854 = vmatprep.subr.mxu0 %v3988_v18  ;;  %3819 = vmatprep.subr.mxu1 %v2820_v22 }
 0x5a1   : > { %3855 = vmatpush3.msra.mxu0 %v3988_v18  ;;  %3820 = vmatpush3.msra.mxu1 %v2820_v22 }
 0x5a2   : > { %3856 = vmatprep.subr.mxu0 %v3989_v19  ;;  %3821 = vmatprep.subr.mxu1 %v2819_v23 }
 0x5a3   : > { %3857 = vmatpush3.msra.mxu0 %v3989_v19  ;;  %3822 = vmatpush3.msra.mxu1 %v2819_v23 }
 0x5a4   : > { %3858 = vmatprep.subr.mxu0 %v3990_v20  ;;  %3823 = vmatprep.subr.mxu1 %v2818_v25 }
 0x5a5   : > { %3859 = vmatpush3.msra.mxu0 %v3990_v20  ;;  %3824 = vmatpush3.msra.mxu1 %v2818_v25 }
 0x642   : > { %v3743_v26 = vpop.f32.mrf.mxu1 }
 0x643   : > { %v2554_v27 = vadd.f32 %v3743_v26, %v4568_v49 }
 0x644   : > { %v2544_v28 = vpop.f32.mrf.mxu1  ;;  %v3785_v33 = vpop.f32.mrf.mxu0 }
 0x645   : > { %v2553_v24 = vadd.f32 %v2544_v28, %v4570_v51  ;;  %v2732_v35 = vadd.f32 %v3785_v33, %v2554_v27 }
 0x646   : > { %v3792_v30 = vpop.f32.mrf.mxu1  ;;  %v2722_v34 = vpop.f32.mrf.mxu0 }
 0x647   : > { %v2731_v32 = vadd.f32 %v2722_v34, %v2553_v24 }
 0x648   : > { %v2808_v31 = vpop.f32.mrf.mxu1 }
 0x649   : > { %3825 = vmatprep.mubr.f32.mxu1 %v2808_v31 }
 0x64a   : > { %3826 = vmatmul.mubr.f32.vlgmr.msra.gmra.mxu1 %v3792_v30 }
 0x70a   : > { %v3827_v29 = vpop.f32.mrf.mxu1 }
 0x70b   : > { %v2910_v36 = vadd.f32 %v3827_v29, %v2732_v35 }
 0x70c   : > { %v2900_v37 = vpop.f32.mrf.mxu1 }
 0x70d   : > { %vm2912_vm4 = vcmp.ge.f32.partialorder %v2910_v36, 0.0  ;;  %v2914_v39 = vmul.f32 0.2, %v2910_v36  ;;  %v2909_v40 = vadd.f32 %v2900_v37, %v2731_v32 }
 0x70f   : > { %vm2911_vm5 = vcmp.ge.f32.partialorder %v2909_v40, 0.0  ;;  %v2913_v41 = vmul.f32 0.2, %v2909_v40  ;;  %v2916_v42 = vsel %vm2912_vm4, %v2910_v36, %v2914_v39 }
 0x710   : > { %v2918_v43 = vmul.f32 %v2916_v42, %v2916_v42 }
 0x711   : > { %v2915_v44 = vsel %vm2911_vm5, %v2909_v40, %v2913_v41 }
 0x712   : > { %v2917_v38 = vmul.f32 %v2915_v44, %v2915_v44 }
 0x714   : > { %3860 = vmatprep.mubr.f32.mxu0 %v2917_v38 }
 0x715   : > { %3861 = vmatmul.mubr.f32.vlgmr.msra.gmra.mxu0 %v2918_v43 }
 0x7d5   : > { %v3862_v45 = vpop.f32.mrf.mxu0 }
 0x7d6   : > { %v2991_v46 = vadd.f32 1e-08, %v3862_v45 }
 0x7d7   : > { %v2985_v47 = vpop.f32.mrf.mxu0 }
 0x7d8   : > { %3971 = vrsqrt.f32 %v2991_v46  ;;  %v2986_v48 = vadd.f32 1e-08, %v2985_v47 }
 0x7da   : > { %3973 = vrsqrt.f32 %v2986_v48 }
 0x7e5   : > { %v3972_v49 = vpop.eup %3971 }
 0x7e6   : > { %v2997_v50 = vmul.f32 %v3972_v49, %v2916_v42 }
 0x7e7   : > { %v3974_v51 = vpop.eup %3973 }
 0x7e8   : > { %v2996_v52 = vmul.f32 %v3974_v51, %v2915_v44  ;;  %2999 = vst [vmem:[%s361_s13 + $0x8] sm:$0xff] %v2997_v50 }
 0x7ea   : > { %2998 = vst [vmem:[%s361_s13] sm:$0xff] %v2996_v52 }
 0x7eb   : > { %4162 = shalt.err (!%p4159_p7)
}
 0x7ec   : > { %s4163_s29 = scalar_lea.hbm %s4584_s18, 256  ;;  %s4167_s2 = scalar_lea.hbm %s4636_s7, 512 }
 0x7ed   : > { %p4164_p6 = scmp.ne.s32.totalorder %s4584_s18, %s4163_s29  ;;  %p4168_p4 = scmp.lt.s32.totalorder %s4584_s18, %s4636_s7 }
 0x7ee   : > { %p4169_p12 = scmp.lt.s32.totalorder %s4167_s2, %s4163_s29 }
 0x7ef   : > { %p4165_p1 = pnand %p4164_p6, %p4662_p2 }
 0x7f0   : > { %p4170_p13 = por %p4169_p12, %p4168_p4 }
 0x7f1   : > { %p4166_p3 = pneg %p4165_p1 }
 0x7f3   : > { %p4171_p0 = pnand %p4170_p13, %p4166_p3 }
 0x7f5   : > { %4174 = shalt.err (!%p4171_p0)
}
 0x7f6   : > { %s4239_s13 = smov 128   ;;  %s4240_s23 = smov 8  }
 0x7f7   : > { %3885 = dma.vmem_to_hbm [thread:$0]  (%p4662_p2), %s4586_s22, 256, %s4584_s18, %s3001_s19, %s4239_s13, %s4239_s13, %s4240_s23  }
 0x7f8 PF: > { %s3029_s11 = sand.u32 1, %s4213_s24   ;;  %p4663_p5 = scmp.ne.s32.totalorder %s4652_s10, 0 }
 0x7f9   : > { %p4664_p8 = scmp.ge.s32.totalorder %s4225_s27, 2  ;;  %s3030_s30 = scalar_lea.sflag [#allocation4], %s3029_s11 }
 0x7fb   : > { %p3908_p9 = pnand %p4664_p8, %p4663_p5 }
 0x7fd   : > { %p3909_p10 = pneg %p3908_p9 }
 0x7ff   : > { %4208 = dma.done.wait (%p3909_p10), %s3030_s30, 256  }
 0x800   : > { %4210 = vsyncadd (%p3909_p10), %s3030_s30, 4294967040  ;;  %p23_p11 = scmp.ge.s32.totalorder %s4380_s14, 4   ;;  %s4665_s24 = smov %s4217_s25 }
 0x801   : > { %s4666_s25 = smov %s4221_s26  ;;  %s4667_s26 = smov %s4391_s9 }
 0x802   : > { %s4668_s27 = smov %s4380_s14  ;;  %25 = sbr.rel (!%p23_p11) target bundleno = 11 (0xb), region = 129 }
 0x807   :  { %3035 = vsyncpa [#allocation3], 1 }
 0x808   :  { %3037 = vsyncpa [#allocation3 + $0x1], 1 }
 0x809   :  { %3038 = vsyncpa [#allocation6], 1 }
 0x80a   :  { %3039 = vsyncpa [#allocation9], 1 }
 0x80b   :  { %3040 = vsyncpa [#allocation12], 1 }
 0x80c   :  { %3041 = vsyncpa [#allocation4], 1 }
 0x80d   :  { %3043 = vsyncpa [#allocation4 + $0x1], 1 }

</bundles_post_ra>
